<compile_context>
chip_gen: v6e
topology: v6e:2x2x1
jax: 0.10.0
libtpu: 0.0.40
codegen_flags: <defaults>
</compile_context>

<pallas_src>
import jax
import jax.numpy as jnp
from jax import lax
from jax.experimental import pallas as pl
from jax.experimental.pallas import tpu as pltpu


def _round_up(x, m):
    return (x + m - 1) // m * m


def _plan(n, feat, itemsize, row_tile):
    """Pick rows-per-grid-step and the scoped-VMEM limit, purely from bytes."""
    try:
        vmem_phys = int(pltpu.get_tpu_info().vmem_capacity_bytes)
    except Exception:
        vmem_phys = 64 << 20  # assume the smaller (v7x-class) VMEM if unknown
    # 64 MiB scoped limit on 128-MiB parts (v5e/v6e), 32 MiB on 64-MiB parts.
    vmem_limit = (64 << 20) if vmem_phys >= (100 << 20) else (32 << 20)

    if row_tile is not None:
        return row_tile, vmem_limit

    n128 = _round_up(n, 128)
    # Resident state: encoded distances (4*N_pad) + stats tile + label/misc
    # headroom.  TODO(synk): spill distances to HBM when this dominates VMEM.
    fixed = 4 * n128 + (64 << 10) + (2 << 20)
    # Per 128 rows: 2 inputs x 2 pipeline buffers in the input dtype plus a
    # ~6x f32 compute working set (x, y, three products, slack).
    bytes_per_128 = 128 * feat * (4 * itemsize + 6 * 4)
    avail = max(vmem_limit - fixed, bytes_per_128)
    rows = (avail // bytes_per_128) * 128
    rows = max(128, min(rows, n128))
    return rows, vmem_limit


def _make_kernel(g_steps):
    """Build the kernel closure for a grid of `g_steps` row tiles."""

    def kernel(margin_ref, lbl_ref, x_ref, y_ref, out_ref, d_ref, stats_ref):
        i = pl.program_id(0)
        eps2 = jnp.float32(1e-16)  # (1e-8)**2 -> clamps each norm at 1e-8

        # ---- running-stats init (persistent (8,128) VMEM scratch) ----------
        @pl.when(i == 0)
        def _init():
            stats_ref[0:1, :] = jnp.full((1, 128), -jnp.inf, dtype=jnp.float32)
            stats_ref[1:2, :] = jnp.full((1, 128), jnp.inf, dtype=jnp.float32)
            stats_ref[2:8, :] = jnp.zeros((6, 128), dtype=jnp.float32)

        # ---- phase 1: per-row cosine distance for this tile ----------------
        x = x_ref[...].astype(jnp.float32)           # (TB, 128, D)
        y = y_ref[...].astype(jnp.float32)

        dotv = jnp.sum(x * y, axis=-1)               # (TB, 128) lane-dense
        nx2 = jnp.sum(x * x, axis=-1)
        ny2 = jnp.sum(y * y, axis=-1)
        # rsqrt(max(n^2, eps^2)) == 1/max(n, eps)  (same clamping as torch),
        # but on the EUP slot instead of a VPU divide chain.
        inv = lax.rsqrt(jnp.maximum(nx2, eps2)) * lax.rsqrt(jnp.maximum(ny2, eps2))
        d = 1.0 - dotv * inv                         # (TB, 128), d in [0, 2]

        lbl = lbl_ref[0]                             # (TB, 128) int32, pad = -1
        pos = lbl == 1
        neg = lbl == 0

        # Encode class into the stored value so no label array has to stay
        # resident for the finalize sweep:
        #   positive -> d (in [0,2]); negative -> d-8 (in [-8,-6]); pad -> +100
        enc = jnp.where(pos, d, jnp.where(neg, d - 8.0, 100.0))
        d_ref[i] = enc                               # persistent across the grid

        # ---- per-step partial stats (per-lane; cross-lane reduce deferred) --
        stats_ref[0:1, :] = jnp.maximum(
            stats_ref[0:1, :],
            jnp.max(jnp.where(pos, d, -jnp.inf), axis=0, keepdims=True))
        stats_ref[1:2, :] = jnp.minimum(
            stats_ref[1:2, :],
            jnp.min(jnp.where(neg, d, jnp.inf), axis=0, keepdims=True))
        stats_ref[2:3, :] = stats_ref[2:3, :] + jnp.sum(
            jnp.where(pos, d, 0.0), axis=0, keepdims=True)
        stats_ref[3:4, :] = stats_ref[3:4, :] + jnp.sum(
            jnp.where(neg, d, 0.0), axis=0, keepdims=True)
        stats_ref[4:5, :] = stats_ref[4:5, :] + jnp.sum(
            pos.astype(jnp.float32), axis=0, keepdims=True)
        stats_ref[5:6, :] = stats_ref[5:6, :] + jnp.sum(
            neg.astype(jnp.float32), axis=0, keepdims=True)

        # ---- phase 2: hard-pair selection on the last grid step ------------
        @pl.when(i == g_steps - 1)
        def _finalize():
            margin = margin_ref[0]
            pos_max = jnp.max(stats_ref[0:1, :])
            neg_min = jnp.min(stats_ref[1:2, :])
            npos = jnp.sum(stats_ref[4:5, :])
            nneg = jnp.sum(stats_ref[5:6, :])
            pos_mean = jnp.sum(stats_ref[2:3, :]) / npos   # 0/0 -> NaN (torch empty mean)
            neg_mean = jnp.sum(stats_ref[3:4, :]) / nneg
            # negative_pairs = negs[negs < (poss.max() if len(poss)>1 else negs.mean())]
            # positive_pairs = poss[poss > (negs.min() if len(negs)>1 else poss.mean())]
            thr_neg = jnp.where(npos > 1.0, pos_max, neg_mean)
            thr_pos = jnp.where(nneg > 1.0, neg_min, pos_mean)

            def slab_loss(slab, acc):
                pacc, nacc = acc
                is_neg = slab < -3.0
                is_pos = jnp.logical_and(slab > -1.0, slab < 3.0)
                dv = jnp.where(is_neg, slab + 8.0, slab)
                psel = jnp.logical_and(is_pos, dv > thr_pos)
                nsel = jnp.logical_and(is_neg, dv < thr_neg)
                pacc = pacc + jnp.sum(jnp.where(psel, dv * dv, 0.0))
                hinge = jnp.maximum(margin - dv, 0.0)
                nacc = nacc + jnp.sum(jnp.where(nsel, hinge * hinge, 0.0))
                return pacc, nacc

            zero = jnp.zeros((), jnp.float32)
            if g_steps == 1:
                pacc, nacc = slab_loss(d_ref[0], (zero, zero))
            else:
                def body(g, acc):
                    return slab_loss(d_ref[g], acc)
                pacc, nacc = lax.fori_loop(0, g_steps, body, (zero, zero))

            out_ref[0, 0] = pacc + nacc

    return kernel


def online_contrastive_loss(emb_a, emb_b, labels, margin=0.2, row_tile=None):
    """emb_a, emb_b: (N, D) float (f32 or bf16); labels: (N,) int 0/1.
    Returns the scalar OnlineContrastiveLoss (cosine-distance metric)."""
    n, feat = emb_a.shape
    itemsize = jnp.dtype(emb_a.dtype).itemsize

    rows, vmem_limit = _plan(n, feat, itemsize, row_tile)
    assert rows % 128 == 0, "row tile must be a multiple of 128"

    n_pad = _round_up(n, rows)
    g = n_pad // rows              # grid steps
    tb = rows // 128               # 128-row blocks per grid step
    pad = n_pad - n

    a = jnp.pad(emb_a, ((0, pad), (0, 0)))
    b = jnp.pad(emb_b, ((0, pad), (0, 0)))
    lbl = jnp.pad(labels.astype(jnp.int32), (0, pad), constant_values=-1)

    a3 = a.reshape(n_pad // 128, 128, feat)     # 128 rows -> sublanes, D -> lanes
    b3 = b.reshape(n_pad // 128, 128, feat)
    lbl3 = lbl.reshape(g, tb, 128)
    margin_arr = jnp.asarray([margin], dtype=jnp.float32)

    out = pl.pallas_call(
        _make_kernel(g),
        out_shape=jax.ShapeDtypeStruct((1, 1), jnp.float32),
        grid=(g,),
        in_specs=[
            # runtime margin scalar in SMEM
            pl.BlockSpec(memory_space=pltpu.MemorySpace.SMEM),
            # labels: one (1, TB, 128) tile per grid step (pipelined, not resident)
            pl.BlockSpec((1, tb, 128), lambda i: (i, 0, 0)),
            # embeddings: pipelined row tiles
            pl.BlockSpec((tb, 128, feat), lambda i: (i, 0, 0)),
            pl.BlockSpec((tb, 128, feat), lambda i: (i, 0, 0)),
        ],
        # scalar loss through SMEM (avoids a lane-sparse vector store)
        out_specs=pl.BlockSpec(memory_space=pltpu.MemorySpace.SMEM),
        scratch_shapes=[
            pltpu.VMEM((g, tb, 128), jnp.float32),   # encoded distances
            pltpu.VMEM((8, 128), jnp.float32),       # running per-lane stats
        ],
        compiler_params=pltpu.CompilerParams(
            # sequential dependency through the persistent scratch.
            # TODO(synk): v7x dual-TC split (parallel distance kernel + tiny
            # finalize) not implemented.
            dimension_semantics=("arbitrary",),
            vmem_limit_bytes=vmem_limit,
        ),
    )(margin_arr, lbl3, a3, b3)
    return out[0, 0]


def _reference_loss(emb_a, emb_b, labels, margin=0.2):
    """Pure-JAX reference mirroring the PyTorch module (sanity check)."""
    eps = 1e-8
    dot = jnp.sum(emb_a * emb_b, axis=-1)
    nx = jnp.linalg.norm(emb_a, axis=-1)
    ny = jnp.linalg.norm(emb_b, axis=-1)
    d = 1.0 - dot / (jnp.maximum(nx, eps) * jnp.maximum(ny, eps))
    pos = labels == 1
    neg = labels == 0
    npos = jnp.sum(pos)
    nneg = jnp.sum(neg)
    poss_max = jnp.max(jnp.where(pos, d, -jnp.inf))
    negs_min = jnp.min(jnp.where(neg, d, jnp.inf))
    negs_mean = jnp.sum(jnp.where(neg, d, 0.0)) / nneg
    poss_mean = jnp.sum(jnp.where(pos, d, 0.0)) / npos
    thr_neg = jnp.where(npos > 1, poss_max, negs_mean)
    thr_pos = jnp.where(nneg > 1, negs_min, poss_mean)
    pos_sel = pos & (d > thr_pos)
    neg_sel = neg & (d < thr_neg)
    ploss = jnp.sum(jnp.where(pos_sel, d * d, 0.0))
    nloss = jnp.sum(jnp.where(neg_sel, jnp.maximum(margin - d, 0.0) ** 2, 0.0))
    return ploss + nloss


if __name__ == "__main__":
    key = jax.random.PRNGKey(0)
    k1, k2, k3, k4, k5 = jax.random.split(key, 5)

    # Case 1: tiny batch, single grid step, heavy row padding, small D.
    n1, d1 = 8, 32
    a1 = jax.random.normal(k1, (n1, d1), dtype=jnp.float32)
    b1 = jax.random.normal(k2, (n1, d1), dtype=jnp.float32)
    l1 = jnp.array([1, 1, 0, 0, 1, 0, 1, 0], dtype=jnp.int32)

    loss1 = jax.block_until_ready(online_contrastive_loss(a1, b1, l1, margin=0.2))
    ref1 = jax.block_until_ready(_reference_loss(a1, b1, l1, margin=0.2))
    assert jnp.allclose(loss1, ref1, rtol=5e-4, atol=5e-4), (loss1, ref1)

    # Case 2: non-multiple-of-128 batch, multi-step grid (row_tile override)
    # exercising the persistent scratch, running stats and finalize sweep.
    n2, d2 = 260, 256
    a2 = jax.random.normal(k3, (n2, d2), dtype=jnp.float32)
    b2 = jax.random.normal(k4, (n2, d2), dtype=jnp.float32)
    l2 = (jax.random.uniform(k5, (n2,)) > 0.5).astype(jnp.int32)

    loss2 = jax.block_until_ready(
        online_contrastive_loss(a2, b2, l2, margin=0.2, row_tile=128))
    ref2 = jax.block_until_ready(_reference_loss(a2, b2, l2, margin=0.2))
    assert jnp.allclose(loss2, ref2, rtol=5e-4, atol=5e-4), (loss2, ref2)

    print("KERNEL_OK")
</pallas_src>

<mosaic_0001>
module attributes {stable_mosaic.version = 11 : i64} {
  func.func @kernel(%arg0: i32, %arg1: memref<1xf32, #tpu.memory_space<smem>>, %arg2: memref<1x1x128xi32, #tpu.memory_space<vmem>>, %arg3: memref<1x128x32xf32, #tpu.memory_space<vmem>>, %arg4: memref<1x128x32xf32, #tpu.memory_space<vmem>>, %arg5: memref<1x1xf32, #tpu.memory_space<smem>>, %arg6: memref<1x1x128xf32, #tpu.memory_space<vmem>>, %arg7: memref<8x128xf32, #tpu.memory_space<vmem>>) attributes {dimension_semantics = [#tpu.dimension_semantics<arbitrary>], iteration_bounds = array<i64: 1>, scalar_prefetch = 0 : i64, scratch_operands = 2 : i64, tpu.core_type = #tpu.core_type<tc>, window_params = [{transform_indices = @transform_0, window_bounds = array<i64: 1>}, {transform_indices = @transform_1, window_bounds = array<i64: 1, 1, 128>}, {transform_indices = @transform_2, window_bounds = array<i64: 1, 128, 32>}, {transform_indices = @transform_3, window_bounds = array<i64: 1, 128, 32>}, {transform_indices = @transform_4, window_bounds = array<i64: 1, 1>}]} {
    %c0_i32 = arith.constant 0 : i32
    %0 = arith.cmpi eq, %arg0, %c0_i32 : i32
    %1 = arith.extui %0 : i1 to i32
    %c0_i32_0 = arith.constant 0 : i32
    %2 = arith.cmpi ne, %1, %c0_i32_0 : i32
    scf.if %2 {
      %cst_50 = arith.constant 0xFF800000 : f32
      %81 = vector.broadcast %cst_50 : f32 to vector<1x128xf32>
      %c0_51 = arith.constant 0 : index
      %c0_52 = arith.constant 0 : index
      %82 = vector.load %arg7[%c0_51, %c0_52] : memref<8x128xf32, #tpu.memory_space<vmem>>, vector<1x128xf32>
      tpu.vector_store %arg7[%c0_51, %c0_52], %81 {strides = array<i32>} : memref<8x128xf32, #tpu.memory_space<vmem>>, vector<1x128xf32>,
      %cst_53 = arith.constant 0x7F800000 : f32
      %83 = vector.broadcast %cst_53 : f32 to vector<1x128xf32>
      %c1_54 = arith.constant 1 : index
      %c0_55 = arith.constant 0 : index
      %84 = vector.load %arg7[%c1_54, %c0_55] : memref<8x128xf32, #tpu.memory_space<vmem>>, vector<1x128xf32>
      tpu.vector_store %arg7[%c1_54, %c0_55], %83 {strides = array<i32>} : memref<8x128xf32, #tpu.memory_space<vmem>>, vector<1x128xf32>,
      %cst_56 = arith.constant 0.000000e+00 : f32
      %85 = vector.broadcast %cst_56 : f32 to vector<6x128xf32>
      %c2_57 = arith.constant 2 : index
      %c0_58 = arith.constant 0 : index
      %86 = vector.load %arg7[%c2_57, %c0_58] : memref<8x128xf32, #tpu.memory_space<vmem>>, vector<6x128xf32>
      tpu.vector_store %arg7[%c2_57, %c0_58], %85 {strides = array<i32>} : memref<8x128xf32, #tpu.memory_space<vmem>>, vector<6x128xf32>,
    } else {
    }
    %c0 = arith.constant 0 : index
    %c0_1 = arith.constant 0 : index
    %c0_2 = arith.constant 0 : index
    %3 = vector.load %arg3[%c0, %c0_1, %c0_2] : memref<1x128x32xf32, #tpu.memory_space<vmem>>, vector<1x128x32xf32>
    %c0_3 = arith.constant 0 : index
    %c0_4 = arith.constant 0 : index
    %c0_5 = arith.constant 0 : index
    %4 = vector.load %arg4[%c0_3, %c0_4, %c0_5] : memref<1x128x32xf32, #tpu.memory_space<vmem>>, vector<1x128x32xf32>
    %5 = arith.mulf %3, %4 : vector<1x128x32xf32>
    %cst = arith.constant dense<0.000000e+00> : vector<1x128xf32>
    %6 = vector.multi_reduction <add>, %5, %cst [2] : vector<1x128x32xf32> to vector<1x128xf32>
    %7 = arith.mulf %3, %3 : vector<1x128x32xf32>
    %cst_6 = arith.constant dense<0.000000e+00> : vector<1x128xf32>
    %8 = vector.multi_reduction <add>, %7, %cst_6 [2] : vector<1x128x32xf32> to vector<1x128xf32>
    %9 = arith.mulf %4, %4 : vector<1x128x32xf32>
    %cst_7 = arith.constant dense<0.000000e+00> : vector<1x128xf32>
    %10 = vector.multi_reduction <add>, %9, %cst_7 [2] : vector<1x128x32xf32> to vector<1x128xf32>
    %cst_8 = arith.constant 1.000000e-16 : f32
    %11 = vector.broadcast %cst_8 : f32 to vector<1x128xf32>
    %12 = arith.maximumf %8, %11 : vector<1x128xf32>
    %13 = math.rsqrt %12 : vector<1x128xf32>
    %cst_9 = arith.constant 1.000000e-16 : f32
    %14 = vector.broadcast %cst_9 : f32 to vector<1x128xf32>
    %15 = arith.maximumf %10, %14 : vector<1x128xf32>
    %16 = math.rsqrt %15 : vector<1x128xf32>
    %17 = arith.mulf %13, %16 : vector<1x128xf32>
    %18 = arith.mulf %6, %17 : vector<1x128xf32>
    %cst_10 = arith.constant 1.000000e+00 : f32
    %19 = vector.broadcast %cst_10 : f32 to vector<1x128xf32>
    %20 = arith.subf %19, %18 : vector<1x128xf32>
    %c0_11 = arith.constant 0 : index
    %c0_12 = arith.constant 0 : index
    %c0_13 = arith.constant 0 : index
    %21 = vector.load %arg2[%c0_11, %c0_12, %c0_13] : memref<1x1x128xi32, #tpu.memory_space<vmem>>, vector<1x1x128xi32>
    %22 = vector.shape_cast %21 : vector<1x1x128xi32> to vector<1x128xi32>
    %c1_i32 = arith.constant 1 : i32
    %23 = vector.broadcast %c1_i32 : i32 to vector<1x128xi32>
    %24 = arith.cmpi eq, %22, %23 : vector<1x128xi32>
    %c0_i32_14 = arith.constant 0 : i32
    %25 = vector.broadcast %c0_i32_14 : i32 to vector<1x128xi32>
    %26 = arith.cmpi eq, %22, %25 : vector<1x128xi32>
    %cst_15 = arith.constant 8.000000e+00 : f32
    %27 = vector.broadcast %cst_15 : f32 to vector<1x128xf32>
    %28 = arith.subf %20, %27 : vector<1x128xf32>
    %cst_16 = arith.constant 1.000000e+02 : f32
    %29 = vector.broadcast %cst_16 : f32 to vector<1x128xf32>
    %30 = arith.select %26, %28, %29 : vector<1x128xi1>, vector<1x128xf32>
    %31 = arith.select %24, %20, %30 : vector<1x128xi1>, vector<1x128xf32>
    %32 = arith.index_cast %arg0 : i32 to index
    %c0_17 = arith.constant 0 : index
    %c0_18 = arith.constant 0 : index
    %33 = vector.load %arg6[%32, %c0_17, %c0_18] : memref<1x1x128xf32, #tpu.memory_space<vmem>>, vector<1x1x128xf32>
    %34 = vector.shape_cast %33 : vector<1x1x128xf32> to vector<1x128xf32>
    %35 = vector.shape_cast %31 : vector<1x128xf32> to vector<1x1x128xf32>
    tpu.vector_store %arg6[%32, %c0_17, %c0_18], %35 {strides = array<i32>} : memref<1x1x128xf32, #tpu.memory_space<vmem>>, vector<1x1x128xf32>,
    %c0_19 = arith.constant 0 : index
    %c0_20 = arith.constant 0 : index
    %36 = vector.load %arg7[%c0_19, %c0_20] : memref<8x128xf32, #tpu.memory_space<vmem>>, vector<1x128xf32>
    %cst_21 = arith.constant 0xFF800000 : f32
    %37 = vector.broadcast %cst_21 : f32 to vector<1x128xf32>
    %38 = arith.select %24, %20, %37 : vector<1x128xi1>, vector<1x128xf32>
    %cst_22 = arith.constant dense<0xFF800000> : vector<128xf32>
    %39 = vector.multi_reduction <maximumf>, %38, %cst_22 [0] : vector<1x128xf32> to vector<128xf32>
    %40 = vector.shape_cast %39 : vector<128xf32> to vector<1x128xf32>
    %41 = arith.maximumf %36, %40 : vector<1x128xf32>
    %c0_23 = arith.constant 0 : index
    %c0_24 = arith.constant 0 : index
    %42 = vector.load %arg7[%c0_23, %c0_24] : memref<8x128xf32, #tpu.memory_space<vmem>>, vector<1x128xf32>
    tpu.vector_store %arg7[%c0_23, %c0_24], %41 {strides = array<i32>} : memref<8x128xf32, #tpu.memory_space<vmem>>, vector<1x128xf32>,
    %c1 = arith.constant 1 : index
    %c0_25 = arith.constant 0 : index
    %43 = vector.load %arg7[%c1, %c0_25] : memref<8x128xf32, #tpu.memory_space<vmem>>, vector<1x128xf32>
    %cst_26 = arith.constant 0x7F800000 : f32
    %44 = vector.broadcast %cst_26 : f32 to vector<1x128xf32>
    %45 = arith.select %26, %20, %44 : vector<1x128xi1>, vector<1x128xf32>
    %cst_27 = arith.constant dense<0x7F800000> : vector<128xf32>
    %46 = vector.multi_reduction <minimumf>, %45, %cst_27 [0] : vector<1x128xf32> to vector<128xf32>
    %47 = vector.shape_cast %46 : vector<128xf32> to vector<1x128xf32>
    %48 = arith.minimumf %43, %47 : vector<1x128xf32>
    %c1_28 = arith.constant 1 : index
    %c0_29 = arith.constant 0 : index
    %49 = vector.load %arg7[%c1_28, %c0_29] : memref<8x128xf32, #tpu.memory_space<vmem>>, vector<1x128xf32>
    tpu.vector_store %arg7[%c1_28, %c0_29], %48 {strides = array<i32>} : memref<8x128xf32, #tpu.memory_space<vmem>>, vector<1x128xf32>,
    %c2 = arith.constant 2 : index
    %c0_30 = arith.constant 0 : index
    %50 = vector.load %arg7[%c2, %c0_30] : memref<8x128xf32, #tpu.memory_space<vmem>>, vector<1x128xf32>
    %cst_31 = arith.constant 0.000000e+00 : f32
    %51 = vector.broadcast %cst_31 : f32 to vector<1x128xf32>
    %52 = arith.select %24, %20, %51 : vector<1x128xi1>, vector<1x128xf32>
    %cst_32 = arith.constant dense<0.000000e+00> : vector<128xf32>
    %53 = vector.multi_reduction <add>, %52, %cst_32 [0] : vector<1x128xf32> to vector<128xf32>
    %54 = vector.shape_cast %53 : vector<128xf32> to vector<1x128xf32>
    %55 = arith.addf %50, %54 : vector<1x128xf32>
    %c2_33 = arith.constant 2 : index
    %c0_34 = arith.constant 0 : index
    %56 = vector.load %arg7[%c2_33, %c0_34] : memref<8x128xf32, #tpu.memory_space<vmem>>, vector<1x128xf32>
    tpu.vector_store %arg7[%c2_33, %c0_34], %55 {strides = array<i32>} : memref<8x128xf32, #tpu.memory_space<vmem>>, vector<1x128xf32>,
    %c3 = arith.constant 3 : index
    %c0_35 = arith.constant 0 : index
    %57 = vector.load %arg7[%c3, %c0_35] : memref<8x128xf32, #tpu.memory_space<vmem>>, vector<1x128xf32>
    %cst_36 = arith.constant 0.000000e+00 : f32
    %58 = vector.broadcast %cst_36 : f32 to vector<1x128xf32>
    %59 = arith.select %26, %20, %58 : vector<1x128xi1>, vector<1x128xf32>
    %cst_37 = arith.constant dense<0.000000e+00> : vector<128xf32>
    %60 = vector.multi_reduction <add>, %59, %cst_37 [0] : vector<1x128xf32> to vector<128xf32>
    %61 = vector.shape_cast %60 : vector<128xf32> to vector<1x128xf32>
    %62 = arith.addf %57, %61 : vector<1x128xf32>
    %c3_38 = arith.constant 3 : index
    %c0_39 = arith.constant 0 : index
    %63 = vector.load %arg7[%c3_38, %c0_39] : memref<8x128xf32, #tpu.memory_space<vmem>>, vector<1x128xf32>
    tpu.vector_store %arg7[%c3_38, %c0_39], %62 {strides = array<i32>} : memref<8x128xf32, #tpu.memory_space<vmem>>, vector<1x128xf32>,
    %c4 = arith.constant 4 : index
    %c0_40 = arith.constant 0 : index
    %64 = vector.load %arg7[%c4, %c0_40] : memref<8x128xf32, #tpu.memory_space<vmem>>, vector<1x128xf32>
    %65 = arith.extui %24 : vector<1x128xi1> to vector<1x128xi32>
    %66 = arith.sitofp %65 : vector<1x128xi32> to vector<1x128xf32>
    %cst_41 = arith.constant dense<0.000000e+00> : vector<128xf32>
    %67 = vector.multi_reduction <add>, %66, %cst_41 [0] : vector<1x128xf32> to vector<128xf32>
    %68 = vector.shape_cast %67 : vector<128xf32> to vector<1x128xf32>
    %69 = arith.addf %64, %68 : vector<1x128xf32>
    %c4_42 = arith.constant 4 : index
    %c0_43 = arith.constant 0 : index
    %70 = vector.load %arg7[%c4_42, %c0_43] : memref<8x128xf32, #tpu.memory_space<vmem>>, vector<1x128xf32>
    tpu.vector_store %arg7[%c4_42, %c0_43], %69 {strides = array<i32>} : memref<8x128xf32, #tpu.memory_space<vmem>>, vector<1x128xf32>,
    %c5 = arith.constant 5 : index
    %c0_44 = arith.constant 0 : index
    %71 = vector.load %arg7[%c5, %c0_44] : memref<8x128xf32, #tpu.memory_space<vmem>>, vector<1x128xf32>
    %72 = arith.extui %26 : vector<1x128xi1> to vector<1x128xi32>
    %73 = arith.sitofp %72 : vector<1x128xi32> to vector<1x128xf32>
    %cst_45 = arith.constant dense<0.000000e+00> : vector<128xf32>
    %74 = vector.multi_reduction <add>, %73, %cst_45 [0] : vector<1x128xf32> to vector<128xf32>
    %75 = vector.shape_cast %74 : vector<128xf32> to vector<1x128xf32>
    %76 = arith.addf %71, %75 : vector<1x128xf32>
    %c5_46 = arith.constant 5 : index
    %c0_47 = arith.constant 0 : index
    %77 = vector.load %arg7[%c5_46, %c0_47] : memref<8x128xf32, #tpu.memory_space<vmem>>, vector<1x128xf32>
    tpu.vector_store %arg7[%c5_46, %c0_47], %76 {strides = array<i32>} : memref<8x128xf32, #tpu.memory_space<vmem>>, vector<1x128xf32>,
    %c0_i32_48 = arith.constant 0 : i32
    %78 = arith.cmpi eq, %arg0, %c0_i32_48 : i32
    %79 = arith.extui %78 : i1 to i32
    %c0_i32_49 = arith.constant 0 : i32
    %80 = arith.cmpi ne, %79, %c0_i32_49 : i32
    scf.if %80 {
      %c0_50 = arith.constant 0 : index
      %81 = memref.load %arg1[%c0_50] : memref<1xf32, #tpu.memory_space<smem>>
      %c0_51 = arith.constant 0 : index
      %c0_52 = arith.constant 0 : index
      %82 = vector.load %arg7[%c0_51, %c0_52] : memref<8x128xf32, #tpu.memory_space<vmem>>, vector<1x128xf32>
      %83 = vector.shape_cast %82 : vector<1x128xf32> to vector<1x1x128xf32>
      %cst_53 = arith.constant dense<0xFF800000> : vector<1xf32>
      %84 = vector.multi_reduction <maximumf>, %83, %cst_53 [1, 2] : vector<1x1x128xf32> to vector<1xf32>
      %85 = vector.shape_cast %84 : vector<1xf32> to vector<1x1x1xf32>
      %86 = vector.extract %85[0, 0, 0] : f32 from vector<1x1x1xf32>
      %c1_54 = arith.constant 1 : index
      %c0_55 = arith.constant 0 : index
      %87 = vector.load %arg7[%c1_54, %c0_55] : memref<8x128xf32, #tpu.memory_space<vmem>>, vector<1x128xf32>
      %88 = vector.shape_cast %87 : vector<1x128xf32> to vector<1x1x128xf32>
      %cst_56 = arith.constant dense<0x7F800000> : vector<1xf32>
      %89 = vector.multi_reduction <minimumf>, %88, %cst_56 [1, 2] : vector<1x1x128xf32> to vector<1xf32>
      %90 = vector.shape_cast %89 : vector<1xf32> to vector<1x1x1xf32>
      %91 = vector.extract %90[0, 0, 0] : f32 from vector<1x1x1xf32>
      %c4_57 = arith.constant 4 : index
      %c0_58 = arith.constant 0 : index
      %92 = vector.load %arg7[%c4_57, %c0_58] : memref<8x128xf32, #tpu.memory_space<vmem>>, vector<1x128xf32>
      %93 = vector.shape_cast %92 : vector<1x128xf32> to vector<1x1x128xf32>
      %cst_59 = arith.constant dense<0.000000e+00> : vector<1xf32>
      %94 = vector.multi_reduction <add>, %93, %cst_59 [1, 2] : vector<1x1x128xf32> to vector<1xf32>
      %95 = vector.shape_cast %94 : vector<1xf32> to vector<1x1x1xf32>
      %96 = vector.extract %95[0, 0, 0] : f32 from vector<1x1x1xf32>
      %c5_60 = arith.constant 5 : index
      %c0_61 = arith.constant 0 : index
      %97 = vector.load %arg7[%c5_60, %c0_61] : memref<8x128xf32, #tpu.memory_space<vmem>>, vector<1x128xf32>
      %98 = vector.shape_cast %97 : vector<1x128xf32> to vector<1x1x128xf32>
      %cst_62 = arith.constant dense<0.000000e+00> : vector<1xf32>
      %99 = vector.multi_reduction <add>, %98, %cst_62 [1, 2] : vector<1x1x128xf32> to vector<1xf32>
      %100 = vector.shape_cast %99 : vector<1xf32> to vector<1x1x1xf32>
      %101 = vector.extract %100[0, 0, 0] : f32 from vector<1x1x1xf32>
      %c2_63 = arith.constant 2 : index
      %c0_64 = arith.constant 0 : index
      %102 = vector.load %arg7[%c2_63, %c0_64] : memref<8x128xf32, #tpu.memory_space<vmem>>, vector<1x128xf32>
      %103 = vector.shape_cast %102 : vector<1x128xf32> to vector<1x1x128xf32>
      %cst_65 = arith.constant dense<0.000000e+00> : vector<1xf32>
      %104 = vector.multi_reduction <add>, %103, %cst_65 [1, 2] : vector<1x1x128xf32> to vector<1xf32>
      %105 = vector.shape_cast %104 : vector<1xf32> to vector<1x1x1xf32>
      %106 = vector.extract %105[0, 0, 0] : f32 from vector<1x1x1xf32>
      %107 = arith.divf %106, %96 : f32
      %c3_66 = arith.constant 3 : index
      %c0_67 = arith.constant 0 : index
      %108 = vector.load %arg7[%c3_66, %c0_67] : memref<8x128xf32, #tpu.memory_space<vmem>>, vector<1x128xf32>
      %109 = vector.shape_cast %108 : vector<1x128xf32> to vector<1x1x128xf32>
      %cst_68 = arith.constant dense<0.000000e+00> : vector<1xf32>
      %110 = vector.multi_reduction <add>, %109, %cst_68 [1, 2] : vector<1x1x128xf32> to vector<1xf32>
      %111 = vector.shape_cast %110 : vector<1xf32> to vector<1x1x1xf32>
      %112 = vector.extract %111[0, 0, 0] : f32 from vector<1x1x1xf32>
      %113 = arith.divf %112, %101 : f32
      %cst_69 = arith.constant 1.000000e+00 : f32
      %114 = arith.cmpf ogt, %96, %cst_69 : f32
      %115 = arith.select %114, %86, %113 : f32
      %cst_70 = arith.constant 1.000000e+00 : f32
      %116 = arith.cmpf ogt, %101, %cst_70 : f32
      %117 = arith.select %116, %91, %107 : f32
      %c0_71 = arith.constant 0 : index
      %c0_72 = arith.constant 0 : index
      %c0_73 = arith.constant 0 : index
      %118 = vector.load %arg6[%c0_71, %c0_72, %c0_73] : memref<1x1x128xf32, #tpu.memory_space<vmem>>, vector<1x1x128xf32>
      %119 = vector.shape_cast %118 : vector<1x1x128xf32> to vector<1x128xf32>
      %cst_74 = arith.constant -3.000000e+00 : f32
      %120 = vector.broadcast %cst_74 : f32 to vector<1x128xf32>
      %121 = arith.cmpf olt, %119, %120 : vector<1x128xf32>
      %cst_75 = arith.constant -1.000000e+00 : f32
      %122 = vector.broadcast %cst_75 : f32 to vector<1x128xf32>
      %123 = arith.cmpf ogt, %119, %122 : vector<1x128xf32>
      %cst_76 = arith.constant 3.000000e+00 : f32
      %124 = vector.broadcast %cst_76 : f32 to vector<1x128xf32>
      %125 = arith.cmpf olt, %119, %124 : vector<1x128xf32>
      %126 = arith.andi %123, %125 : vector<1x128xi1>
      %cst_77 = arith.constant 8.000000e+00 : f32
      %127 = vector.broadcast %cst_77 : f32 to vector<1x128xf32>
      %128 = arith.addf %119, %127 : vector<1x128xf32>
      %129 = arith.select %121, %128, %119 : vector<1x128xi1>, vector<1x128xf32>
      %130 = vector.broadcast %117 : f32 to vector<1x128xf32>
      %131 = arith.cmpf ogt, %129, %130 : vector<1x128xf32>
      %132 = arith.andi %126, %131 : vector<1x128xi1>
      %133 = vector.broadcast %115 : f32 to vector<1x128xf32>
      %134 = arith.cmpf olt, %129, %133 : vector<1x128xf32>
      %135 = arith.andi %121, %134 : vector<1x128xi1>
      %136 = arith.mulf %129, %129 : vector<1x128xf32>
      %cst_78 = arith.constant 0.000000e+00 : f32
      %137 = vector.broadcast %cst_78 : f32 to vector<1x128xf32>
      %138 = arith.select %132, %136, %137 : vector<1x128xi1>, vector<1x128xf32>
      %139 = vector.shape_cast %138 : vector<1x128xf32> to vector<1x1x128xf32>
      %cst_79 = arith.constant dense<0.000000e+00> : vector<1xf32>
      %140 = vector.multi_reduction <add>, %139, %cst_79 [1, 2] : vector<1x1x128xf32> to vector<1xf32>
      %141 = vector.shape_cast %140 : vector<1xf32> to vector<1x1x1xf32>
      %142 = vector.extract %141[0, 0, 0] : f32 from vector<1x1x1xf32>
      %cst_80 = arith.constant 0.000000e+00 : f32
      %143 = arith.addf %cst_80, %142 : f32
      %144 = vector.broadcast %81 : f32 to vector<1x128xf32>
      %145 = arith.subf %144, %129 : vector<1x128xf32>
      %cst_81 = arith.constant 0.000000e+00 : f32
      %146 = vector.broadcast %cst_81 : f32 to vector<1x128xf32>
      %147 = arith.maximumf %145, %146 : vector<1x128xf32>
      %148 = arith.mulf %147, %147 : vector<1x128xf32>
      %cst_82 = arith.constant 0.000000e+00 : f32
      %149 = vector.broadcast %cst_82 : f32 to vector<1x128xf32>
      %150 = arith.select %135, %148, %149 : vector<1x128xi1>, vector<1x128xf32>
      %151 = vector.shape_cast %150 : vector<1x128xf32> to vector<1x1x128xf32>
      %cst_83 = arith.constant dense<0.000000e+00> : vector<1xf32>
      %152 = vector.multi_reduction <add>, %151, %cst_83 [1, 2] : vector<1x1x128xf32> to vector<1xf32>
      %153 = vector.shape_cast %152 : vector<1xf32> to vector<1x1x1xf32>
      %154 = vector.extract %153[0, 0, 0] : f32 from vector<1x1x1xf32>
      %cst_84 = arith.constant 0.000000e+00 : f32
      %155 = arith.addf %cst_84, %154 : f32
      %156 = arith.addf %143, %155 : f32
      %c0_85 = arith.constant 0 : index
      %c0_86 = arith.constant 0 : index
      %157 = memref.load %arg5[%c0_85, %c0_86] : memref<1x1xf32, #tpu.memory_space<smem>>
      memref.store %156, %arg5[%c0_85, %c0_86] : memref<1x1xf32, #tpu.memory_space<smem>>
    } else {
    }
    return
  }
  func.func @transform_0(%arg0: i32) -> i32 {
    %c0_i32 = arith.constant 0 : i32
    %c0_i32_0 = arith.constant 0 : i32
    return %c0_i32 : i32
  }
  func.func @transform_1(%arg0: i32) -> (i32, i32, i32) {
    %c0_i32 = arith.constant 0 : i32
    %c0_i32_0 = arith.constant 0 : i32
    %c0_i32_1 = arith.constant 0 : i32
    return %arg0, %c0_i32, %c0_i32_0 : i32, i32, i32
  }
  func.func @transform_2(%arg0: i32) -> (i32, i32, i32) {
    %c0_i32 = arith.constant 0 : i32
    %c0_i32_0 = arith.constant 0 : i32
    %c0_i32_1 = arith.constant 0 : i32
    return %arg0, %c0_i32, %c0_i32_0 : i32, i32, i32
  }
  func.func @transform_3(%arg0: i32) -> (i32, i32, i32) {
    %c0_i32 = arith.constant 0 : i32
    %c0_i32_0 = arith.constant 0 : i32
    %c0_i32_1 = arith.constant 0 : i32
    return %arg0, %c0_i32, %c0_i32_0 : i32, i32, i32
  }
  func.func @transform_4(%arg0: i32) -> (i32, i32) {
    %c0_i32 = arith.constant 0 : i32
    %c0_i32_0 = arith.constant 0 : i32
    %c0_i32_1 = arith.constant 0 : i32
    return %c0_i32, %c0_i32_0 : i32, i32
  }
}

</mosaic_0001>

<bundles_post_ra>
// kernel: tpu_custom_call.1
= control target key start
LH: loop header
LB: loop body
LE: loop exit
PB: predicated region body
PF: predicated region fallthrough
CT: control target
= control target key end

     0   :  { %vm74_vm0 = vcmask 261120   ;;  %s5808_s0 = inlined_call_operand.<no memory space> [shape: f32[1], index: 0, kind: input, shape index: {}]   ;;  %s5809_s1 = inlined_call_operand.vmem [shape: s32[1,1,128], index: 1, kind: input, shape index: {}]   ;;  %s5810_s2 = inlined_call_operand.vmem [shape: f32[1,128,32], index: 2, kind: input, shape index: {}]   ;;  %s5811_s3 = inlined_call_operand.vmem [shape: f32[1,128,32], index: 3, kind: input, shape index: {}]   ;;  %s5812_s4 = inlined_call_operand.hbm [shape: f32[1,1], index: 4, kind: output, shape index: {}]  }
   0x1   :  { %v42_v0 = vld [vmem:[%s5811_s3] sm:$0xff]  ;;  %v4228_v2 = vld [vmem:[%s5811_s3 + $0x8] sm:$0xff]  ;;  %v4242_v9 = vld [vmem:[%s5811_s3 + $0x10] sm:$0xff] }
   0x2   :  { %v26_v1 = vld [vmem:[%s5810_s2] sm:$0xff]  ;;  %v187_v3 = vmul.f32 %v42_v0, %v42_v0  ;;  %v188_v5 = vmul.f32 %v4228_v2, %v4228_v2  ;;  %v4235_v6 = vld [vmem:[%s5810_s2 + $0x8] sm:$0xff]  ;;  %v4247_v10 = vld [vmem:[%s5810_s2 + $0x10] sm:$0xff]  ;;  %v189_v15 = vmul.f32 %v4242_v9, %v4242_v9 }
   0x3   :  { %v123_v4 = vmul.f32 %v26_v1, %v26_v1  ;;  %v58_v7 = vmul.f32 %v42_v0, %v26_v1  ;;  %v124_v8 = vmul.f32 %v4235_v6, %v4235_v6  ;;  %v125_v16 = vmul.f32 %v4247_v10, %v4247_v10  ;;  %v4260_v17 = vld [vmem:[%s5811_s3 + $0x18] sm:$0xff]  ;;  %v4276_v23 = vld [vmem:[%s5811_s3 + $0x20] sm:$0xff] }
   0x4   :  { %v203_v11 = vsel %vm74_vm0, %v187_v3, 0.0  ;;  %v206_v13 = vsel %vm74_vm0, %v188_v5, 0.0  ;;  %v4265_v18 = vld [vmem:[%s5810_s2 + $0x18] sm:$0xff]  ;;  %v209_v19 = vsel %vm74_vm0, %v189_v15, 0.0  ;;  %v190_v21 = vmul.f32 %v4260_v17, %v4260_v17  ;;  %v4281_v24 = vld [vmem:[%s5810_s2 + $0x20] sm:$0xff] }
   0x5   :  { %v139_v12 = vsel %vm74_vm0, %v123_v4, 0.0  ;;  %204 = vadd.xlane.f32.xlu1 %v203_v11  ;;  %v142_v14 = vsel %vm74_vm0, %v124_v8, 0.0  ;;  %v145_v20 = vsel %vm74_vm0, %v125_v16, 0.0  ;;  %v126_v22 = vmul.f32 %v4265_v18, %v4265_v18 }
   0x6   :  { %140 = vadd.xlane.f32.xlu0 %v139_v12 }
   0x9   :  { %207 = vadd.xlane.f32.xlu1 %v206_v13 }
   0xa   :  { %143 = vadd.xlane.f32.xlu0 %v142_v14 }
   0xb   :  { %10 = vsyncpa [#allocation6], 0  ;;  %v212_v25 = vsel %vm74_vm0, %v190_v21, 0.0  ;;  %v148_v26 = vsel %vm74_vm0, %v126_v22, 0.0  ;;  %v191_v27 = vmul.f32 %v4276_v23, %v4276_v23  ;;  %v127_v28 = vmul.f32 %v4281_v24, %v4281_v24  ;;  %v4292_v29 = vld [vmem:[%s5811_s3 + $0x28] sm:$0xff]  ;;  %v4311_v36 = vld [vmem:[%s5811_s3 + $0x30] sm:$0xff] }
   0xc   :  { %v4297_v30 = vld [vmem:[%s5810_s2 + $0x28] sm:$0xff]  ;;  %v192_v31 = vmul.f32 %v4292_v29, %v4292_v29  ;;  %v4306_v35 = vsel %vm74_vm0, %v58_v7, 0.0  ;;  %v4316_v37 = vld [vmem:[%s5810_s2 + $0x30] sm:$0xff]  ;;  %v193_v40 = vmul.f32 %v4311_v36, %v4311_v36  ;;  %v4327_v42 = vld [vmem:[%s5811_s3 + $0x38] sm:$0xff]  ;;  %vm5833_vm3 = vcmask 1040384   ;;  %s4193_s14 = smov [#allocation5]  }
   0xd   :  { %210 = vadd.xlane.f32.xlu1 %v209_v19  ;;  %v215_v32 = vsel %vm74_vm0, %v191_v27, 0.0  ;;  %v151_v33 = vsel %vm74_vm0, %v127_v28, 0.0  ;;  %v128_v34 = vmul.f32 %v4297_v30, %v4297_v30  ;;  %v129_v41 = vmul.f32 %v4316_v37, %v4316_v37  ;;  %v4332_v43 = vld [vmem:[%s5810_s2 + $0x38] sm:$0xff]  ;;  %v4343_v48 = vld [vmem:[%s5811_s3 + $0x40] sm:$0xff]  ;;  %v4359_v54 = vld [vmem:[%s5811_s3 + $0x48] sm:$0xff] }
   0xe   :  { %146 = vadd.xlane.f32.xlu0 %v145_v20  ;;  %v218_v38 = vsel %vm74_vm0, %v192_v31, 0.0  ;;  %v221_v44 = vsel %vm74_vm0, %v193_v40, 0.0  ;;  %v194_v46 = vmul.f32 %v4327_v42, %v4327_v42  ;;  %v130_v47 = vmul.f32 %v4332_v43, %v4332_v43  ;;  %v4348_v49 = vld [vmem:[%s5810_s2 + $0x40] sm:$0xff]  ;;  %v4364_v55 = vld [vmem:[%s5810_s2 + $0x48] sm:$0xff]  ;;  %v4375_v60 = vld [vmem:[%s5811_s3 + $0x50] sm:$0xff] }
   0xf   :  { %v154_v39 = vsel %vm74_vm0, %v128_v34, 0.0  ;;  %v157_v45 = vsel %vm74_vm0, %v129_v41, 0.0  ;;  %v195_v52 = vmul.f32 %v4343_v48, %v4343_v48  ;;  %v131_v53 = vmul.f32 %v4348_v49, %v4348_v49  ;;  %v4380_v61 = vld [vmem:[%s5810_s2 + $0x50] sm:$0xff]  ;;  %v4391_v3 = vld [vmem:[%s5811_s3 + $0x58] sm:$0xff]  ;;  %v4407_v12 = vld [vmem:[%s5811_s3 + $0x60] sm:$0xff] }
  0x10   :  { %v224_v50 = vsel %vm74_vm0, %v194_v46, 0.0  ;;  %v160_v51 = vsel %vm74_vm0, %v130_v47, 0.0  ;;  %v196_v58 = vmul.f32 %v4359_v54, %v4359_v54  ;;  %v132_v59 = vmul.f32 %v4364_v55, %v4364_v55  ;;  %v4396_v4 = vld [vmem:[%s5810_s2 + $0x58] sm:$0xff]  ;;  %v4412_v13 = vld [vmem:[%s5810_s2 + $0x60] sm:$0xff]  ;;  %v4423_v20 = vld [vmem:[%s5811_s3 + $0x68] sm:$0xff] }
  0x11   :  { %213 = vadd.xlane.f32.xlu1 %v212_v25  ;;  %v227_v56 = vsel %vm74_vm0, %v195_v52, 0.0  ;;  %v163_v57 = vsel %vm74_vm0, %v131_v53, 0.0  ;;  %v197_v0 = vmul.f32 %v4375_v60, %v4375_v60  ;;  %v133_v1 = vmul.f32 %v4380_v61, %v4380_v61  ;;  %v4428_v21 = vld [vmem:[%s5810_s2 + $0x68] sm:$0xff]  ;;  %v4439_v28 = vld [vmem:[%s5811_s3 + $0x70] sm:$0xff]  ;;  %v4455_v40 = vld [vmem:[%s5811_s3 + $0x78] sm:$0xff] }
  0x12   :  { %149 = vadd.xlane.f32.xlu0 %v148_v26  ;;  %v230_v62 = vsel %vm74_vm0, %v196_v58, 0.0  ;;  %v166_v63 = vsel %vm74_vm0, %v132_v59, 0.0  ;;  %v198_v8 = vmul.f32 %v4391_v3, %v4391_v3  ;;  %v134_v11 = vmul.f32 %v4396_v4, %v4396_v4  ;;  %v4444_v31 = vld [vmem:[%s5810_s2 + $0x70] sm:$0xff]  ;;  %v41_v41 = vld [vmem:[%s5810_s2 + $0x78] sm:$0xff] }
  0x13   :  { %v233_v5 = vsel %vm74_vm0, %v197_v0, 0.0  ;;  %v169_v7 = vsel %vm74_vm0, %v133_v1, 0.0  ;;  %v199_v16 = vmul.f32 %v4407_v12, %v4407_v12  ;;  %v135_v19 = vmul.f32 %v4412_v13, %v4412_v13 }
  0x14   :  { %v236_v14 = vsel %vm74_vm0, %v198_v8, 0.0  ;;  %v172_v15 = vsel %vm74_vm0, %v134_v11, 0.0  ;;  %v200_v26 = vmul.f32 %v4423_v20, %v4423_v20  ;;  %v136_v27 = vmul.f32 %v4428_v21, %v4428_v21 }
  0x15   :  { %216 = vadd.xlane.f32.xlu1 %v215_v32  ;;  %v239_v22 = vsel %vm74_vm0, %v199_v16, 0.0  ;;  %v175_v25 = vsel %vm74_vm0, %v135_v19, 0.0  ;;  %v4188_v32 = vmov 0.0   ;;  %v202_v46 = vmul.f32 %v4455_v40, %v4455_v40 }
  0x16   :  { %152 = vadd.xlane.f32.xlu0 %v151_v33  ;;  %25 = vst [vmem:[#allocation3 + $0x2] sm:$0x3f] %v4188_v32  ;;  %v242_v33 = vsel %vm74_vm0, %v200_v26, 0.0  ;;  %v178_v34 = vsel %vm74_vm0, %v136_v27, 0.0  ;;  %v138_v47 = vmul.f32 %v41_v41, %v41_v41  ;;  %v59_v58 = vmul.f32 %v4228_v2, %v4235_v6 }
  0x17   :  { %v61_v1 = vmul.f32 %v4260_v17, %v4265_v18  ;;  %v62_v8 = vmul.f32 %v4276_v23, %v4281_v24  ;;  %v67_v23 = vmul.f32 %v4359_v54, %v4364_v55  ;;  %v66_v24 = vmul.f32 %v4343_v48, %v4348_v49 }
  0x18   :  { %v78_v0 = vsel %vm74_vm0, %v59_v58, 0.0  ;;  %v71_v48 = vmul.f32 %v4423_v20, %v4428_v21  ;;  %v70_v49 = vmul.f32 %v4407_v12, %v4412_v13  ;;  %v4189_v13 = vmov 0  }
  0x19   :  { %219 = vadd.xlane.f32.xlu1 %v218_v38  ;;  %v201_v38 = vmul.f32 %v4439_v28, %v4439_v28  ;;  %v84_v2 = vsel %vm74_vm0, %v61_v1, 0.0  ;;  %v87_v18 = vsel %vm74_vm0, %v62_v8, 0.0  ;;  %4108 = vset.pattern.permute.xlu0 %v4189_v13  ;;  %vm1753_vm4 = vcmask 130112  }
  0x1a   :  { %155 = vadd.xlane.f32.xlu0 %v154_v39  ;;  %v137_v39 = vmul.f32 %v4444_v31, %v4444_v31  ;;  %v114_v55 = vsel %vm74_vm0, %v71_v48, 0.0  ;;  %4109 = vset.pattern.permute.xlu1 %v4189_v13  ;;  %vm1760_vm5 = vcmask 195712   ;;  %vm1767_vm6 = vcmask 261312  }
  0x1b   :  { %vm5830_vm7 = vcmask 326912   ;;  %vm5829_vm8 = vcmask 392512   ;;  %vm1788_vm9 = vcmask 458112   ;;  %vm1795_vm10 = vcmask 523712  }
  0x1c   :  { %vm1802_vm11 = vcmask 589312   ;;  %vm1809_vm12 = vcmask 654912   ;;  %vm1816_vm13 = vcmask 720512   ;;  %vm1823_vm14 = vcmask 786112  }
  0x1d   :  { %222 = vadd.xlane.f32.xlu1 %v221_v44  ;;  %v245_v44 = vsel %vm74_vm0, %v201_v38, 0.0  ;;  %v3911_v59 = vld [vmem:[#allocation3 + $0x4] sm:$0x1]  ;;  %vm1830_vm15 = vcmask 851712  }
  0x1e   :  { %158 = vadd.xlane.f32.xlu0 %v157_v45  ;;  %v181_v45 = vsel %vm74_vm0, %v137_v39, 0.0 }
  0x21   :  { %225 = vadd.xlane.f32.xlu1 %v224_v50  ;;  %v4467_v50 = vld [vmem:[%s5809_s1] sm:$0x1] }
  0x22   :  { %161 = vadd.xlane.f32.xlu0 %v160_v51  ;;  %vm365_vm1 = vcmp.eq.s32.totalorder %v4467_v50, 0  ;;  %v3917_v51 = vld [vmem:[#allocation3 + $0x5] sm:$0x1]  ;;  %vm5834_vm2 = vcmp.eq.s32.totalorder %v4467_v50, 1 }
  0x23   :  { %v4081_v52 = vsel %vm365_vm1, 1.0, %v4188_v32 }
  0x24   :  { %v3921_v53 = vadd.f32 %v4081_v52, %v3917_v51 }
  0x25   :  { %228 = vadd.xlane.f32.xlu1 %v227_v56  ;;  %v248_v56 = vsel %vm74_vm0, %v202_v46, 0.0 }
  0x26   :  { %164 = vadd.xlane.f32.xlu0 %v163_v57  ;;  %v184_v57 = vsel %vm74_vm0, %v138_v47, 0.0  ;;  %3922 = vst [vmem:[#allocation3 + $0x5] sm:$0x1] %v3921_v53 }
  0x29   :  { %231 = vadd.xlane.f32.xlu1 %v230_v62  ;;  %v4080_v62 = vsel %vm5834_vm2, 1.0, %v4188_v32 }
  0x2a   :  { %167 = vadd.xlane.f32.xlu0 %v166_v63  ;;  %v3915_v63 = vadd.f32 %v4080_v62, %v3911_v59 }
  0x2c   :  { %3916 = vst [vmem:[#allocation3 + $0x4] sm:$0x1] %v3915_v63 }
  0x2d   :  { %234 = vadd.xlane.f32.xlu1 %v233_v5  ;;  %v60_v5 = vmul.f32 %v4242_v9, %v4247_v10  ;;  %v65_v9 = vmul.f32 %v4327_v42, %v4332_v43  ;;  %v64_v10 = vmul.f32 %v4311_v36, %v4316_v37  ;;  %v99_v42 = vsel %vm74_vm0, %v66_v24, 0.0 }
  0x2e   :  { %170 = vadd.xlane.f32.xlu0 %v169_v7  ;;  %v63_v7 = vmul.f32 %v4292_v29, %v4297_v30  ;;  %v102_v30 = vsel %vm74_vm0, %v67_v23, 0.0  ;;  %v69_v36 = vmul.f32 %v4391_v3, %v4396_v4  ;;  %v68_v37 = vmul.f32 %v4375_v60, %v4380_v61 }
  0x2f   :  { %v81_v6 = vsel %vm74_vm0, %v60_v5, 0.0  ;;  %v93_v29 = vsel %vm74_vm0, %v64_v10, 0.0  ;;  %v111_v3 = vsel %vm74_vm0, %v70_v49, 0.0  ;;  %v73_v60 = vmul.f32 %v4455_v40, %v41_v41 }
  0x30   :  { %v90_v17 = vsel %vm74_vm0, %v63_v7, 0.0  ;;  %v108_v43 = vsel %vm74_vm0, %v69_v36, 0.0  ;;  %v105_v54 = vsel %vm74_vm0, %v68_v37, 0.0  ;;  %v72_v61 = vmul.f32 %v4439_v28, %v4444_v31 }
  0x31   :  { %237 = vadd.xlane.f32.xlu1 %v236_v14  ;;  %v120_v4 = vsel %vm74_vm0, %v73_v60, 0.0  ;;  %v3961_v14 = vld [vmem:[#allocation3 + $0x5] sm:$0x1]  ;;  %v5813_v49 = vlaneseq }
  0x32   :  { %173 = vadd.xlane.f32.xlu0 %v172_v15  ;;  %v117_v11 = vsel %vm74_vm0, %v72_v61, 0.0  ;;  %v3962_v15 = vsel %vm5833_vm3, %v3961_v14, 0.0 }
  0x33   :  { %v3950_v12 = vld [vmem:[#allocation3 + $0x4] sm:$0x1] }
  0x34   :  { %v3951_v16 = vsel %vm5833_vm3, %v3950_v12, 0.0 }
  0x35   :  { %240 = vadd.xlane.f32.xlu1 %v239_v22 }
  0x36   :  { %176 = vadd.xlane.f32.xlu0 %v175_v25 }
  0x39   :  { %243 = vadd.xlane.f32.xlu1 %v242_v33 }
  0x3a   :  { %179 = vadd.xlane.f32.xlu0 %v178_v34 }
  0x3d   :  { %246 = vadd.xlane.f32.xlu1 %v245_v44 }
  0x3e   :  { %182 = vadd.xlane.f32.xlu0 %v181_v45 }
  0x41   :  { %249 = vadd.xlane.f32.xlu1 %v248_v56 }
  0x42   :  { %185 = vadd.xlane.f32.xlu0 %v184_v57 }
  0x45   :  { %79 = vadd.xlane.f32.xlu1 %v78_v0 }
  0x46   :  { %76 = vadd.xlane.f32.xlu0 %v4306_v35  ;;  %v96_v35 = vsel %vm74_vm0, %v65_v9, 0.0  ;;  %vm1837_vm0 = vcmask 917312  }
  0x49   :  { %85 = vadd.xlane.f32.xlu1 %v84_v2 }
  0x4a   :  { %82 = vadd.xlane.f32.xlu0 %v81_v6 }
  0x4d   :  { %91 = vadd.xlane.f32.xlu1 %v90_v17 }
  0x4e   :  { %88 = vadd.xlane.f32.xlu0 %v87_v18 }
  0x51   :  { %97 = vadd.xlane.f32.xlu1 %v96_v35 }
  0x52   :  { %94 = vadd.xlane.f32.xlu0 %v93_v29 }
  0x55   :  { %103 = vadd.xlane.f32.xlu1 %v102_v30 }
  0x56   :  { %100 = vadd.xlane.f32.xlu0 %v99_v42 }
  0x59   :  { %109 = vadd.xlane.f32.xlu1 %v108_v43 }
  0x5a   :  { %106 = vadd.xlane.f32.xlu0 %v105_v54 }
  0x5d   :  { %115 = vadd.xlane.f32.xlu1 %v114_v55 }
  0x5e   :  { %112 = vadd.xlane.f32.xlu0 %v111_v3 }
  0x61   :  { %121 = vadd.xlane.f32.xlu1 %v120_v4 }
  0x62   :  { %118 = vadd.xlane.f32.xlu0 %v117_v11 }
  0x65   :  { %3963 = vadd.xlane.f32.xlu1 %v3962_v15 }
  0x66   :  { %3952 = vadd.xlane.f32.xlu0 %v3951_v16  ;;  %v4532_v16 = vshrl.u32 %v5813_v49, 7  ;;  %v4191_v49 = vmov inf  }
  0x67   :  { %24 = vst [vmem:[#allocation3 + $0x1] sm:$0x1] %v4191_v49 }
  0x8e   :  { %v205_v19 = vpop.xlane.xlu1 %204 }
  0x8f   :  { %v141_v20 = vpop.xlane.xlu0 %140  ;;  %v283_v46 = vmax.f32 %v205_v19, 1e-16 }
  0x90   :  { %v251_v52 = vmax.f32 %v141_v20, 1e-16 }
  0x91   :  { %4110 = vrsqrt.f32 %v283_v46 }
  0x92   :  { %v208_v21 = vpop.xlane.xlu1 %207  ;;  %4112 = vrsqrt.f32 %v251_v52 }
  0x93   :  { %v144_v22 = vpop.xlane.xlu0 %143  ;;  %v284_v53 = vmax.f32 %v208_v21, 1e-16 }
  0x94   :  { %v252_v56 = vmax.f32 %v144_v22, 1e-16 }
  0x95   :  { %4114 = vrsqrt.f32 %v284_v53 }
  0x96   :  { %v211_v25 = vpop.xlane.xlu1 %210  ;;  %4116 = vrsqrt.f32 %v252_v56 }
  0x97   :  { %v147_v26 = vpop.xlane.xlu0 %146  ;;  %v285_v57 = vmax.f32 %v211_v25, 1e-16  ;;  %v4190_v25 = vmov 1966171168  }
  0x98   :  { %v253_v62 = vmax.f32 %v147_v26, 1e-16  ;;  %v915_v26 = vunpack.c.l.s4 %v4190_v25 }
  0x99   :  { %4118 = vrsqrt.f32 %v285_v57  ;;  %v4546_v57 = vsub.s32 2, %v4532_v16 }
  0x9a   :  { %v214_v27 = vpop.xlane.xlu1 %213  ;;  %4120 = vrsqrt.f32 %v253_v62  ;;  %v916_v46 = vunpack.c.0.s8 %v915_v26  ;;  %v4555_v62 = vsub.s32 5, %v4532_v16 }
  0x9b   :  { %v150_v28 = vpop.xlane.xlu0 %149  ;;  %v286_v63 = vmax.f32 %v214_v27, 1e-16 }
  0x9c   :  { %v254_v0 = vmax.f32 %v150_v28, 1e-16 }
  0x9d   :  { %4122 = vrsqrt.f32 %v286_v63 }
  0x9e   :  { %v217_v31 = vpop.xlane.xlu1 %216  ;;  %4124 = vrsqrt.f32 %v254_v0  ;;  %v4111_v42 = vpop.eup %4110 }
  0x9f   :  { %v153_v32 = vpop.xlane.xlu0 %152  ;;  %v287_v1 = vmax.f32 %v217_v31, 1e-16  ;;  %v4113_v37 = vpop.eup %4112 }
  0xa0   :  { %v255_v6 = vmax.f32 %v153_v32, 1e-16  ;;  %v315_v53 = vmul.f32 %v4113_v37, %v4111_v42 }
  0xa1   :  { %4126 = vrsqrt.f32 %v287_v1 }
  0xa2   :  { %v220_v33 = vpop.xlane.xlu1 %219  ;;  %4128 = vrsqrt.f32 %v255_v6  ;;  %v4115_v54 = vpop.eup %4114 }
  0xa3   :  { %v156_v34 = vpop.xlane.xlu0 %155  ;;  %v288_v7 = vmax.f32 %v220_v33, 1e-16  ;;  %v4117_v55 = vpop.eup %4116 }
  0xa4   :  { %v256_v8 = vmax.f32 %v156_v34, 1e-16  ;;  %v316_v34 = vmul.f32 %v4117_v55, %v4115_v54 }
  0xa5   :  { %4130 = vrsqrt.f32 %v288_v7 }
  0xa6   :  { %v223_v38 = vpop.xlane.xlu1 %222  ;;  %4132 = vrsqrt.f32 %v256_v8  ;;  %v4119_v4 = vpop.eup %4118 }
  0xa7   :  { %v159_v39 = vpop.xlane.xlu0 %158  ;;  %v289_v17 = vmax.f32 %v223_v38, 1e-16  ;;  %v4121_v14 = vpop.eup %4120  ;;  %v4539_v38 = vsub.s32 0, %v4532_v16 }
  0xa8   :  { %v257_v10 = vmax.f32 %v159_v39, 1e-16  ;;  %v317_v7 = vmul.f32 %v4121_v14, %v4119_v4 }
  0xa9   :  { %4134 = vrsqrt.f32 %v289_v17  ;;  %v4563_v17 = vsub.s32 7, %v4532_v16 }
  0xaa   :  { %v226_v40 = vpop.xlane.xlu1 %225  ;;  %4136 = vrsqrt.f32 %v257_v10  ;;  %v4123_v13 = vpop.eup %4122 }
  0xab   :  { %v162_v41 = vpop.xlane.xlu0 %161  ;;  %v290_v35 = vmax.f32 %v226_v40, 1e-16  ;;  %v4125_v19 = vpop.eup %4124 }
  0xac   :  { %v258_v29 = vmax.f32 %v162_v41, 1e-16 }
  0xad   :  { %4138 = vrsqrt.f32 %v290_v35  ;;  %v318_v35 = vmul.f32 %v4125_v19, %v4123_v13 }
  0xae   :  { %v229_v44 = vpop.xlane.xlu1 %228  ;;  %4140 = vrsqrt.f32 %v258_v29  ;;  %v4127_v27 = vpop.eup %4126 }
  0xaf   :  { %v165_v45 = vpop.xlane.xlu0 %164  ;;  %v291_v23 = vmax.f32 %v229_v44, 1e-16  ;;  %v4129_v31 = vpop.eup %4128 }
  0xb0   :  { %v259_v36 = vmax.f32 %v165_v45, 1e-16  ;;  %v4543_v45 = vsub.s32 1, %v4532_v16  ;;  %v319_v29 = vmul.f32 %v4129_v31, %v4127_v27 }
  0xb1   :  { %4142 = vrsqrt.f32 %v291_v23 }
  0xb2   :  { %v232_v47 = vpop.xlane.xlu1 %231  ;;  %4144 = vrsqrt.f32 %v259_v36  ;;  %v4131_v32 = vpop.eup %4130 }
  0xb3   :  { %v168_v51 = vpop.xlane.xlu0 %167  ;;  %v292_v43 = vmax.f32 %v232_v47, 1e-16  ;;  %v4133_v39 = vpop.eup %4132 }
  0xb4   :  { %v260_v48 = vmax.f32 %v168_v51, 1e-16  ;;  %v320_v19 = vmul.f32 %v4133_v39, %v4131_v32 }
  0xb5   :  { %4146 = vrsqrt.f32 %v292_v43 }
  0xb6   :  { %v235_v58 = vpop.xlane.xlu1 %234  ;;  %4148 = vrsqrt.f32 %v260_v48  ;;  %v4135_v47 = vpop.eup %4134 }
  0xb7   :  { %v4524_v59 = vpop.xlane.xlu0 %170  ;;  %v293_v3 = vmax.f32 %v235_v58, 1e-16  ;;  %v4137_v56 = vpop.eup %4136  ;;  %v4549_v58 = vsub.s32 3, %v4532_v16 }
  0xb8   :  { %v261_v11 = vmax.f32 %v4524_v59, 1e-16  ;;  %v4552_v59 = vsub.s32 4, %v4532_v16 }
  0xb9   :  { %4150 = vrsqrt.f32 %v293_v3 }
  0xba   :  { %v238_v5 = vpop.xlane.xlu1 %237  ;;  %4152 = vrsqrt.f32 %v261_v11  ;;  %v4139_v63 = vpop.eup %4138 }
  0xbb   :  { %v174_v2 = vpop.xlane.xlu0 %173  ;;  %v294_v12 = vmax.f32 %v238_v5, 1e-16  ;;  %v4560_v5 = vsub.s32 6, %v4532_v16 }
  0xbc   :  { %v262_v15 = vmax.f32 %v174_v2, 1e-16  ;;  %v4141_v2 = vpop.eup %4140 }
  0xbd   :  { %4154 = vrsqrt.f32 %v294_v12 }
  0xbe   :  { %v241_v18 = vpop.xlane.xlu1 %240  ;;  %4156 = vrsqrt.f32 %v262_v15 }
  0xbf   :  { %v177_v9 = vpop.xlane.xlu0 %176  ;;  %v295_v20 = vmax.f32 %v241_v18, 1e-16  ;;  %v4566_v18 = vsub.s32 %v916_v46, %v4532_v16 }
  0xc0   :  { %v263_v28 = vmax.f32 %v177_v9, 1e-16  ;;  %v4143_v9 = vpop.eup %4142 }
  0xc1   :  { %4158 = vrsqrt.f32 %v295_v20  ;;  %v4145_v23 = vpop.eup %4144  ;;  %v321_v20 = vmul.f32 %v4137_v56, %v4135_v47 }
  0xc2   :  { %v244_v24 = vpop.xlane.xlu1 %243  ;;  %4160 = vrsqrt.f32 %v263_v28  ;;  %v4147_v37 = vpop.eup %4146  ;;  %v323_v56 = vmul.f32 %v4145_v23, %v4143_v9 }
  0xc3   :  { %v4526_v30 = vpop.xlane.xlu0 %179  ;;  %v296_v33 = vmax.f32 %v244_v24, 1e-16  ;;  %v4149_v3 = vpop.eup %4148 }
  0xc4   :  { %v264_v40 = vmax.f32 %v4526_v30, 1e-16 }
  0xc5   :  { %4162 = vrsqrt.f32 %v296_v33  ;;  %v322_v33 = vmul.f32 %v4141_v2, %v4139_v63 }
  0xc6   :  { %v247_v60 = vpop.xlane.xlu1 %246  ;;  %4164 = vrsqrt.f32 %v264_v40  ;;  %v4151_v13 = vpop.eup %4150 }
  0xc7   :  { %v4528_v61 = vpop.xlane.xlu0 %182  ;;  %v297_v51 = vmax.f32 %v247_v60, 1e-16 }
  0xc8   :  { %v265_v10 = vmax.f32 %v4528_v61, 1e-16 }
  0xc9   :  { %4166 = vrsqrt.f32 %v297_v51 }
  0xca   :  { %v4534_v21 = vpop.xlane.xlu1 %249  ;;  %4168 = vrsqrt.f32 %v265_v10 }
  0xcb   :  { %v4536_v22 = vpop.xlane.xlu0 %185  ;;  %v298_v43 = vmax.f32 %v4534_v21, 1e-16  ;;  %v4153_v21 = vpop.eup %4152 }
  0xcc   :  { %v266_v15 = vmax.f32 %v4536_v22, 1e-16  ;;  %v4155_v31 = vpop.eup %4154 }
  0xcd   :  { %4170 = vrsqrt.f32 %v298_v43 }
  0xce   :  { %v80_v41 = vpop.xlane.xlu1 %79  ;;  %4172 = vrsqrt.f32 %v266_v15 }
  0xcf   :  { %v77_v44 = vpop.xlane.xlu0 %76  ;;  %v332_v52 = vmul.f32 %v316_v34, %v80_v41  ;;  %v4157_v41 = vpop.eup %4156 }
  0xd0   :  { %v331_v1 = vmul.f32 %v315_v53, %v77_v44  ;;  %v4159_v51 = vpop.eup %4158  ;;  %v324_v53 = vmul.f32 %v4149_v3, %v4147_v37 }
  0xd1   :  { %v4557_v0 = vsub.f32 1.0, %v332_v52  ;;  %v4161_v63 = vpop.eup %4160 }
  0xd2   :  { %v86_v6 = vpop.xlane.xlu1 %85  ;;  %v4578_v54 = vsub.f32 1.0, %v331_v1  ;;  %v4163_v37 = vpop.eup %4162 }
  0xd3   :  { %v83_v8 = vpop.xlane.xlu0 %82  ;;  %v1920_v24 = vrot.slane %v4557_v0, %v4539_v38  ;;  %v1924_v30 = vrot.slane %v4557_v0, %v4543_v45  ;;  %v1928_v42 = vrot.slane %v4557_v0, %v4546_v57  ;;  %v1932_v36 = vrot.slane %v4557_v0, %v4549_v58 }
  0xd4   :  { %v1936_v48 = vrot.slane %v4557_v0, %v4552_v59  ;;  %v1940_v55 = vrot.slane %v4557_v0, %v4555_v62  ;;  %v1944_v4 = vrot.slane %v4557_v0, %v4560_v5  ;;  %v1948_v11 = vrot.slane %v4557_v0, %v4563_v17 }
  0xd5   :  { %v2446_v14 = vcombine.low %v1920_v24, %v1924_v30  ;;  %v2447_v12 = vcombine.low %v1928_v42, %v1932_v36  ;;  %v1888_v34 = vrot.slane %v4578_v54, %v4539_v38  ;;  %v1892_v40 = vrot.slane %v4578_v54, %v4543_v45 }
  0xd6   :  { %v92_v60 = vpop.xlane.xlu1 %91  ;;  %v2448_v25 = vcombine.low %v1936_v48, %v1940_v55  ;;  %v2449_v26 = vcombine.low %v1944_v4, %v1948_v11  ;;  %v1896_v47 = vrot.slane %v4578_v54, %v4546_v57  ;;  %v1900_v10 = vrot.slane %v4578_v54, %v4549_v58 }
  0xd7   :  { %v89_v61 = vpop.xlane.xlu0 %88  ;;  %v2456_v27 = vrot.slane %v2446_v14, %v4566_v18  ;;  %v2463_v28 = vrot.slane %v2447_v12, %v4566_v18  ;;  %v1904_v24 = vrot.slane %v4578_v54, %v4552_v59  ;;  %v334_v30 = vmul.f32 %v318_v35, %v86_v6 }
  0xd8   :  { %v2470_v39 = vrot.slane %v2448_v25, %v4566_v18  ;;  %v2477_v44 = vrot.slane %v2449_v26, %v4566_v18  ;;  %v335_v52 = vmul.f32 %v319_v29, %v89_v61  ;;  %v333_v42 = vmul.f32 %v317_v7, %v83_v8  ;;  %v4165_v61 = vpop.eup %4164 }
  0xd9   :  { %v2478_v46 = vcombine.low %v2456_v27, %v2463_v28  ;;  %v1908_v36 = vrot.slane %v4578_v54, %v4555_v62  ;;  %v1912_v29 = vrot.slane %v4578_v54, %v4560_v5  ;;  %v1916_v48 = vrot.slane %v4578_v54, %v4563_v17  ;;  %v4613_v35 = vpop.eup %4166 }
  0xda   :  { %v98_v22 = vpop.xlane.xlu1 %97  ;;  %v2479_v1 = vcombine.low %v2470_v39, %v2477_v44  ;;  %v2397_v55 = vcombine.low %v1888_v34, %v1892_v40  ;;  %v2398_v3 = vcombine.low %v1896_v47, %v1900_v10  ;;  %v4611_v4 = vsub.f32 1.0, %v335_v52 }
  0xdb   :  { %v95_v32 = vpop.xlane.xlu0 %94  ;;  %v2486_v2 = vrot.slane %v2478_v46, %v4566_v18  ;;  %v326_v6 = vmul.f32 %v4157_v41, %v4155_v31  ;;  %v325_v7 = vmul.f32 %v4153_v21, %v4151_v13  ;;  %v327_v8 = vmul.f32 %v4161_v63, %v4159_v51 }
  0xdc   :  { %v2493_v43 = vrot.slane %v2479_v1, %v4566_v18  ;;  %v2399_v14 = vcombine.low %v1904_v24, %v1908_v36  ;;  %v2400_v12 = vcombine.low %v1912_v29, %v1916_v48  ;;  %v2407_v15 = vrot.slane %v2397_v55, %v4566_v18 }
  0xdd   :  { %v4618_v25 = vsub.f32 1.0, %v334_v30  ;;  %v4620_v26 = vsub.f32 1.0, %v333_v42  ;;  %v336_v27 = vmul.f32 %v320_v19, %v92_v60  ;;  %v2414_v28 = vrot.slane %v2398_v3, %v4566_v18  ;;  %v4169_v19 = vpop.eup %4168 }
  0xde   :  { %v104_v9 = vpop.xlane.xlu1 %103  ;;  %v4615_v11 = vcombine.low %v2486_v2, %v2493_v43  ;;  %v338_v34 = vmul.f32 %v322_v33, %v98_v22  ;;  %v337_v40 = vmul.f32 %v321_v20, %v95_v32  ;;  %v2421_v13 = vrot.slane %v2399_v14, %v4566_v18  ;;  %v4171_v63 = vpop.eup %4170 }
  0xdf   :  { %v101_v23 = vpop.xlane.xlu0 %100  ;;  %v2428_v21 = vrot.slane %v2400_v12, %v4566_v18  ;;  %v340_v39 = vmul.f32 %v324_v53, %v104_v9  ;;  %v2429_v44 = vcombine.low %v2407_v15, %v2414_v28  ;;  %v2016_v46 = vrot.slane %v4611_v4, %v4539_v38  ;;  %v4173_v9 = vpop.eup %4172 }
  0xe0   :  { %3330 = vperm.xlu1 %4109, %v4615_v11   ;;  %v2020_v60 = vrot.slane %v4611_v4, %v4543_v45  ;;  %v339_v47 = vmul.f32 %v323_v56, %v101_v23  ;;  %v2024_v20 = vrot.slane %v4611_v4, %v4546_v57  ;;  %v2028_v22 = vrot.slane %v4611_v4, %v4549_v58 }
  0xe1   :  { %v2430_v33 = vcombine.low %v2421_v13, %v2428_v21  ;;  %v2437_v32 = vrot.slane %v2429_v44, %v4566_v18  ;;  %v328_v51 = vmul.f32 %v4165_v61, %v4163_v37  ;;  %v2032_v52 = vrot.slane %v4611_v4, %v4552_v59 }
  0xe2   :  { %v110_v31 = vpop.xlane.xlu1 %109  ;;  %v2036_v53 = vrot.slane %v4611_v4, %v4555_v62  ;;  %v2040_v10 = vrot.slane %v4611_v4, %v4560_v5  ;;  %v2044_v24 = vrot.slane %v4611_v4, %v4563_v17  ;;  %v4644_v30 = vsub.f32 1.0, %v336_v27 }
  0xe3   :  { %v107_v41 = vpop.xlane.xlu0 %106  ;;  %v2444_v1 = vrot.slane %v2430_v33, %v4566_v18  ;;  %v342_v56 = vmul.f32 %v326_v6, %v110_v31  ;;  %v4646_v42 = vsub.f32 1.0, %v338_v34  ;;  %v2593_v37 = vcombine.low %v2016_v46, %v2020_v60 }
  0xe4   :  { %v341_v36 = vmul.f32 %v325_v7, %v107_v41  ;;  %v2594_v48 = vcombine.low %v2024_v20, %v2028_v22  ;;  %v2595_v55 = vcombine.low %v2032_v52, %v2036_v53  ;;  %v4650_v3 = vsub.f32 1.0, %v337_v40 }
  0xe5   :  { %v4648_v23 = vcombine.low %v2437_v32, %v2444_v1  ;;  %v4652_v61 = vsub.f32 1.0, %v340_v39  ;;  %v2596_v6 = vcombine.low %v2040_v10, %v2044_v24  ;;  %v2603_v14 = vrot.slane %v2593_v37, %v4566_v18 }
  0xe6   :  { %v116_v2 = vpop.xlane.xlu1 %115  ;;  %v4655_v12 = vsub.f32 1.0, %v339_v47  ;;  %v4658_v7 = vsub.f32 1.0, %v342_v56  ;;  %v2610_v15 = vrot.slane %v2594_v48, %v4566_v18  ;;  %v2617_v27 = vrot.slane %v2595_v55, %v4566_v18 }
  0xe7   :  { %v113_v29 = vpop.xlane.xlu0 %112  ;;  %v344_v43 = vmul.f32 %v328_v51, %v116_v2  ;;  %3327 = vperm.xlu0 %4108, %v4648_v23   ;;  %3473 = vperm.xlu1 %4109, %v4648_v23   ;;  %v4663_v34 = vsub.f32 1.0, %v341_v36  ;;  %v2624_v13 = vrot.slane %v2596_v6, %v4566_v18  ;;  %v330_v21 = vmul.f32 %v4173_v9, %v4171_v63 }
  0xe8   :  { %v343_v40 = vmul.f32 %v327_v8, %v113_v29  ;;  %v2625_v41 = vcombine.low %v2603_v14, %v2610_v15  ;;  %v1952_v39 = vrot.slane %v4620_v26, %v4539_v38  ;;  %v1956_v44 = vrot.slane %v4620_v26, %v4543_v45 }
  0xe9   :  { %5835 = vst [vmem:[#allocation8_spill] sm:$0xff] %v4663_v34  ;;  %v4666_v31 = vsub.f32 1.0, %v344_v43  ;;  %v2626_v46 = vcombine.low %v2617_v27, %v2624_v13  ;;  %v1960_v33 = vrot.slane %v4620_v26, %v4546_v57  ;;  %v1964_v8 = vrot.slane %v4620_v26, %v4549_v58 }
  0xea   :  { %v122_v28 = vpop.xlane.xlu1 %121  ;;  %v2633_v20 = vrot.slane %v2625_v41, %v4566_v18  ;;  %v329_v22 = vmul.f32 %v4169_v19, %v4613_v35  ;;  %v1968_v32 = vrot.slane %v4620_v26, %v4552_v59  ;;  %v1972_v51 = vrot.slane %v4620_v26, %v4555_v62 }
  0xeb   :  { %5836 = vst [vmem:[#allocation9_spill] sm:$0xff] %v4666_v31  ;;  %v346_v60 = vmul.f32 %v330_v21, %v122_v28  ;;  %v119_v47 = vpop.xlane.xlu0 %118  ;;  %3476 = vperm.xlu1 %4109, %v4615_v11   ;;  %v4683_v52 = vsub.f32 1.0, %v343_v40  ;;  %v2640_v53 = vrot.slane %v2626_v46, %v4566_v18  ;;  %v1976_v63 = vrot.slane %v4620_v26, %v4560_v5 }
  0xec   :  { %v1980_v1 = vrot.slane %v4620_v26, %v4563_v17  ;;  %v4690_v56 = vmul.f32 %v329_v22, %v119_v47  ;;  %v2495_v2 = vcombine.low %v1952_v39, %v1956_v44  ;;  %v2496_v35 = vcombine.low %v1960_v33, %v1964_v8 }
  0xed   :  { %5837 = vst [vmem:[#allocation10_spill] sm:$0xff] %v4683_v52  ;;  %v2497_v19 = vcombine.low %v1968_v32, %v1972_v51  ;;  %v4692_v10 = vcombine.low %v2633_v20, %v2640_v53  ;;  %v4694_v24 = vsub.f32 1.0, %v346_v60  ;;  %v2048_v29 = vrot.slane %v4644_v30, %v4539_v38 }
  0xee   :  { %v2498_v36 = vcombine.low %v1976_v63, %v1980_v1  ;;  %v2505_v37 = vrot.slane %v2495_v2, %v4566_v18  ;;  %v2512_v9 = vrot.slane %v2496_v35, %v4566_v18  ;;  %v2052_v48 = vrot.slane %v4644_v30, %v4543_v45 }
  0xef   :  { %5838 = vst [vmem:[#allocation11_spill] sm:$0xff] %v4694_v24  ;;  %v2519_v43 = vrot.slane %v2497_v19, %v4566_v18  ;;  %3485 = vperm.xlu0 %4108, %v4692_v10   ;;  %v2056_v6 = vrot.slane %v4644_v30, %v4546_v57  ;;  %v2060_v14 = vrot.slane %v4644_v30, %v4549_v58 }
  0xf0   :  { %v2526_v55 = vrot.slane %v2498_v36, %v4566_v18  ;;  %v2064_v15 = vrot.slane %v4644_v30, %v4552_v59  ;;  %v2527_v27 = vcombine.low %v2505_v37, %v2512_v9  ;;  %v2068_v28 = vrot.slane %v4644_v30, %v4555_v62 }
  0xf1   :  { %v2072_v40 = vrot.slane %v4644_v30, %v4560_v5  ;;  %v2076_v13 = vrot.slane %v4644_v30, %v4563_v17  ;;  %v2642_v41 = vcombine.low %v2048_v29, %v2052_v48  ;;  %v2643_v39 = vcombine.low %v2056_v6, %v2060_v14 }
  0xf2   :  { %v2528_v21 = vcombine.low %v2519_v43, %v2526_v55  ;;  %v2080_v44 = vrot.slane %v4650_v3, %v4539_v38  ;;  %v2535_v46 = vrot.slane %v2527_v27, %v4566_v18  ;;  %v2644_v60 = vcombine.low %v2064_v15, %v2068_v28 }
  0xf3   :  { %v2645_v47 = vcombine.low %v2072_v40, %v2076_v13  ;;  %v2084_v33 = vrot.slane %v4650_v3, %v4543_v45  ;;  %v2652_v20 = vrot.slane %v2642_v41, %v4566_v18  ;;  %v2659_v22 = vrot.slane %v2643_v39, %v4566_v18 }
  0xf4   :  { %v2542_v8 = vrot.slane %v2528_v21, %v4566_v18  ;;  %v2088_v32 = vrot.slane %v4650_v3, %v4546_v57  ;;  %v2666_v51 = vrot.slane %v2644_v60, %v4566_v18  ;;  %v2092_v63 = vrot.slane %v4650_v3, %v4549_v58 }
  0xf5   :  { %v2673_v53 = vrot.slane %v2645_v47, %v4566_v18  ;;  %v2096_v1 = vrot.slane %v4650_v3, %v4552_v59  ;;  %v2674_v35 = vcombine.low %v2652_v20, %v2659_v22  ;;  %v2100_v19 = vrot.slane %v4650_v3, %v4555_v62 }
  0xf6   :  { %v4733_v2 = vcombine.low %v2535_v46, %v2542_v8  ;;  %v2104_v36 = vrot.slane %v4650_v3, %v4560_v5  ;;  %v2108_v37 = vrot.slane %v4650_v3, %v4563_v17  ;;  %v2691_v9 = vcombine.low %v2080_v44, %v2084_v33 }
  0xf7   :  { %v2675_v29 = vcombine.low %v2666_v51, %v2673_v53  ;;  %v2692_v43 = vcombine.low %v2088_v32, %v2092_v63  ;;  %v2682_v48 = vrot.slane %v2674_v35, %v4566_v18  ;;  %v2693_v55 = vcombine.low %v2096_v1, %v2100_v19 }
  0xf8   :  { %3333 = vperm.xlu1 %4109, %v4733_v2   ;;  %v1984_v6 = vrot.slane %v4618_v25, %v4539_v38  ;;  %v1988_v14 = vrot.slane %v4618_v25, %v4543_v45  ;;  %v2694_v27 = vcombine.low %v2104_v36, %v2108_v37  ;;  %v2701_v28 = vrot.slane %v2691_v9, %v4566_v18 }
  0xf9   :  { %v2689_v15 = vrot.slane %v2675_v29, %v4566_v18  ;;  %v2708_v40 = vrot.slane %v2692_v43, %v4566_v18  ;;  %v2715_v13 = vrot.slane %v2693_v55, %v4566_v18  ;;  %v1992_v21 = vrot.slane %v4618_v25, %v4546_v57 }
  0xfa   :  { %v1996_v41 = vrot.slane %v4618_v25, %v4549_v58  ;;  %v2000_v39 = vrot.slane %v4618_v25, %v4552_v59  ;;  %v2722_v46 = vrot.slane %v2694_v27, %v4566_v18  ;;  %v2004_v47 = vrot.slane %v4618_v25, %v4555_v62 }
  0xfb   :  { %v4757_v44 = vcombine.low %v2682_v48, %v2689_v15  ;;  %v2723_v60 = vcombine.low %v2701_v28, %v2708_v40  ;;  %v2008_v33 = vrot.slane %v4618_v25, %v4560_v5  ;;  %v2012_v8 = vrot.slane %v4618_v25, %v4563_v17 }
  0xfc   :  { %3479 = vperm.xlu1 %4109, %v4733_v2   ;;  %v2544_v20 = vcombine.low %v1984_v6, %v1988_v14  ;;  %v2545_v22 = vcombine.low %v1992_v21, %v1996_v41  ;;  %v2724_v32 = vcombine.low %v2715_v13, %v2722_v46  ;;  %v2546_v53 = vcombine.low %v2000_v39, %v2004_v47 }
  0xfd   :  { %3488 = vperm.xlu0 %4108, %v4757_v44   ;;  %v2731_v51 = vrot.slane %v2723_v60, %v4566_v18  ;;  %v2112_v63 = vrot.slane %v4646_v42, %v4539_v38  ;;  %v2547_v1 = vcombine.low %v2008_v33, %v2012_v8  ;;  %v2116_v36 = vrot.slane %v4646_v42, %v4543_v45 }
  0xfe   :  { %v2554_v35 = vrot.slane %v2544_v20, %v4566_v18  ;;  %v2561_v19 = vrot.slane %v2545_v22, %v4566_v18  ;;  %v2738_v29 = vrot.slane %v2724_v32, %v4566_v18  ;;  %v2568_v37 = vrot.slane %v2546_v53, %v4566_v18 }
  0xff   :  { %v2120_v9 = vrot.slane %v4646_v42, %v4546_v57  ;;  %v2124_v43 = vrot.slane %v4646_v42, %v4549_v58  ;;  %v2575_v48 = vrot.slane %v2547_v1, %v4566_v18  ;;  %v2128_v6 = vrot.slane %v4646_v42, %v4552_v59 }
 0x100   :  { %v2576_v55 = vcombine.low %v2554_v35, %v2561_v19  ;;  %v2132_v14 = vrot.slane %v4646_v42, %v4555_v62  ;;  %v4786_v15 = vcombine.low %v2731_v51, %v2738_v29  ;;  %v2136_v27 = vrot.slane %v4646_v42, %v4560_v5 }
 0x101   :  { %v2140_v28 = vrot.slane %v4646_v42, %v4563_v17  ;;  %v2740_v40 = vcombine.low %v2112_v63, %v2116_v36  ;;  %v2577_v13 = vcombine.low %v2568_v37, %v2575_v48  ;;  %v2741_v41 = vcombine.low %v2120_v9, %v2124_v43 }
 0x102   :  { %5839 = vst [vmem:[#allocation12_spill] sm:$0xff] %v4786_v15  ;;  %v2584_v21 = vrot.slane %v2576_v55, %v4566_v18  ;;  %v2742_v39 = vcombine.low %v2128_v6, %v2132_v14  ;;  %3491 = vperm.xlu0 %4108, %v4786_v15   ;;  %v2144_v47 = vrot.slane %v4655_v12, %v4539_v38 }
 0x103   :  { %v2743_v46 = vcombine.low %v2136_v27, %v2140_v28  ;;  %v2750_v60 = vrot.slane %v2740_v40, %v4566_v18  ;;  %v2148_v33 = vrot.slane %v4655_v12, %v4543_v45  ;;  %v2591_v8 = vrot.slane %v2577_v13, %v4566_v18 }
 0x104   :  { %v2757_v20 = vrot.slane %v2741_v41, %v4566_v18  ;;  %v2764_v22 = vrot.slane %v2742_v39, %v4566_v18  ;;  %v2152_v32 = vrot.slane %v4655_v12, %v4546_v57  ;;  %v2156_v53 = vrot.slane %v4655_v12, %v4549_v58 }
 0x105   :  { %v2771_v51 = vrot.slane %v2743_v46, %v4566_v18  ;;  %v2160_v63 = vrot.slane %v4655_v12, %v4552_v59  ;;  %v2164_v1 = vrot.slane %v4655_v12, %v4555_v62  ;;  %v4811_v35 = vcombine.low %v2584_v21, %v2591_v8 }
 0x106   :  { %v2772_v19 = vcombine.low %v2750_v60, %v2757_v20  ;;  %v2168_v36 = vrot.slane %v4655_v12, %v4560_v5  ;;  %v2172_v29 = vrot.slane %v4655_v12, %v4563_v17  ;;  %v2789_v9 = vcombine.low %v2144_v47, %v2148_v33 }
 0x107   :  { %v2773_v37 = vcombine.low %v2764_v22, %v2771_v51  ;;  %v2790_v43 = vcombine.low %v2152_v32, %v2156_v53  ;;  %v2791_v48 = vcombine.low %v2160_v63, %v2164_v1  ;;  %3336 = vperm.xlu1 %4109, %v4811_v35   ;;  %v2176_v14 = vrot.slane %v4652_v61, %v4539_v38 }
 0x108   :  { %v2780_v55 = vrot.slane %v2772_v19, %v4566_v18  ;;  %v2792_v6 = vcombine.low %v2168_v36, %v2172_v29  ;;  %v2180_v27 = vrot.slane %v4652_v61, %v4543_v45  ;;  %v2799_v40 = vrot.slane %v2789_v9, %v4566_v18 }
 0x109   :  { %v2787_v28 = vrot.slane %v2773_v37, %v4566_v18  ;;  %v2806_v13 = vrot.slane %v2790_v43, %v4566_v18  ;;  %v2813_v21 = vrot.slane %v2791_v48, %v4566_v18  ;;  %v2184_v39 = vrot.slane %v4652_v61, %v4546_v57 }
 0x10a   :  { %v2820_v41 = vrot.slane %v2792_v6, %v4566_v18  ;;  %v2188_v46 = vrot.slane %v4652_v61, %v4549_v58  ;;  %v2192_v60 = vrot.slane %v4652_v61, %v4552_v59  ;;  %v2196_v8 = vrot.slane %v4652_v61, %v4555_v62 }
 0x10b   :  { %v4834_v47 = vcombine.low %v2780_v55, %v2787_v28  ;;  %v2821_v33 = vcombine.low %v2799_v40, %v2806_v13  ;;  %v2200_v20 = vrot.slane %v4652_v61, %v4560_v5  ;;  %3482 = vperm.xlu1 %4109, %v4811_v35   ;;  %v2204_v32 = vrot.slane %v4652_v61, %v4563_v17 }
 0x10c   :  { %v2822_v22 = vcombine.low %v2813_v21, %v2820_v41  ;;  %v2838_v51 = vcombine.low %v2176_v14, %v2180_v27  ;;  %v2839_v53 = vcombine.low %v2184_v39, %v2188_v46  ;;  %v2840_v1 = vcombine.low %v2192_v60, %v2196_v8 }
 0x10d   :  { %5840 = vst [vmem:[#allocation13_spill] sm:$0xff] %v4834_v47  ;;  %3494 = vperm.xlu0 %4108, %v4834_v47   ;;  %v2829_v63 = vrot.slane %v2821_v33, %v4566_v18  ;;  %v2208_v19 = vrot.slane %v4663_v34, %v4539_v38  ;;  %v2212_v36 = vrot.slane %v4663_v34, %v4543_v45 }
 0x10e   :  { %v2836_v29 = vrot.slane %v2822_v22, %v4566_v18  ;;  %v2841_v37 = vcombine.low %v2200_v20, %v2204_v32  ;;  %v2848_v9 = vrot.slane %v2838_v51, %v4566_v18  ;;  %v2855_v43 = vrot.slane %v2839_v53, %v4566_v18 }
 0x10f   :  { %v2862_v48 = vrot.slane %v2840_v1, %v4566_v18  ;;  %v2216_v55 = vrot.slane %v4663_v34, %v4546_v57  ;;  %v2220_v6 = vrot.slane %v4663_v34, %v4549_v58  ;;  %v2224_v14 = vrot.slane %v4663_v34, %v4552_v59  ;;  %3339 = vperm.xlu1 %4109, %v4692_v10  }
 0x110   :  { %v4859_v27 = vcombine.low %v2829_v63, %v2836_v29  ;;  %v2869_v28 = vrot.slane %v2841_v37, %v4566_v18  ;;  %v2870_v40 = vcombine.low %v2848_v9, %v2855_v43  ;;  %v2228_v13 = vrot.slane %v4663_v34, %v4555_v62 }
 0x111   :  { %v2232_v21 = vrot.slane %v4663_v34, %v4560_v5  ;;  %v2236_v41 = vrot.slane %v4663_v34, %v4563_v17  ;;  %v2887_v39 = vcombine.low %v2208_v19, %v2212_v36  ;;  %v2888_v46 = vcombine.low %v2216_v55, %v2220_v6 }
 0x112   :  { %5841 = vst [vmem:[#allocation14_spill] sm:$0xff] %v4859_v27  ;;  %3497 = vperm.xlu0 %4108, %v4859_v27   ;;  %v2871_v60 = vcombine.low %v2862_v48, %v2869_v28  ;;  %v2878_v33 = vrot.slane %v2870_v40, %v4566_v18  ;;  %v2889_v8 = vcombine.low %v2224_v14, %v2228_v13 }
 0x113   :  { %v2240_v20 = vrot.slane %v4658_v7, %v4539_v38  ;;  %v2890_v22 = vcombine.low %v2232_v21, %v2236_v41  ;;  %v2897_v32 = vrot.slane %v2887_v39, %v4566_v18  ;;  %v2904_v51 = vrot.slane %v2888_v46, %v4566_v18  ;;  %3342 = vperm.xlu1 %4109, %v4757_v44  }
 0x114   :  { %v2244_v53 = vrot.slane %v4658_v7, %v4543_v45  ;;  %v2885_v63 = vrot.slane %v2871_v60, %v4566_v18  ;;  %v2911_v1 = vrot.slane %v2889_v8, %v4566_v18  ;;  %v2248_v19 = vrot.slane %v4658_v7, %v4546_v57 }
 0x115   :  { %v2252_v36 = vrot.slane %v4658_v7, %v4549_v58  ;;  %v2918_v29 = vrot.slane %v2890_v22, %v4566_v18  ;;  %v2919_v37 = vcombine.low %v2897_v32, %v2904_v51  ;;  %v2256_v9 = vrot.slane %v4658_v7, %v4552_v59 }
 0x116   :  { %v2260_v43 = vrot.slane %v4658_v7, %v4555_v62  ;;  %v4889_v48 = vcombine.low %v2878_v33, %v2885_v63  ;;  %v2264_v55 = vrot.slane %v4658_v7, %v4560_v5  ;;  %v2268_v6 = vrot.slane %v4658_v7, %v4563_v17 }
 0x117   :  { %v2936_v14 = vcombine.low %v2240_v20, %v2244_v53  ;;  %v2920_v28 = vcombine.low %v2911_v1, %v2918_v29  ;;  %v2927_v40 = vrot.slane %v2919_v37, %v4566_v18  ;;  %v2937_v13 = vcombine.low %v2248_v19, %v2252_v36  ;;  %3345 = vperm.xlu1 %4109, %v4786_v15  }
 0x118   :  { %5842 = vst [vmem:[#allocation15_spill] sm:$0xff] %v4889_v48  ;;  %v2938_v21 = vcombine.low %v2256_v9, %v2260_v43  ;;  %v4897_v41 = vsub.f32 1.0, %v4690_v56  ;;  %3500 = vperm.xlu0 %4108, %v4889_v48   ;;  %v2939_v39 = vcombine.low %v2264_v55, %v2268_v6  ;;  %v2272_v60 = vrot.slane %v4683_v52, %v4539_v38 }
 0x119   :  { %v2946_v46 = vrot.slane %v2936_v14, %v4566_v18  ;;  %v2934_v33 = vrot.slane %v2920_v28, %v4566_v18  ;;  %v2953_v8 = vrot.slane %v2937_v13, %v4566_v18  ;;  %v2276_v56 = vrot.slane %v4683_v52, %v4543_v45 }
 0x11a   :  { %5843 = vst [vmem:[#allocation16_spill] sm:$0xff] %v4897_v41  ;;  %v2960_v20 = vrot.slane %v2938_v21, %v4566_v18  ;;  %v2967_v22 = vrot.slane %v2939_v39, %v4566_v18  ;;  %v2280_v32 = vrot.slane %v4683_v52, %v4546_v57  ;;  %v2284_v51 = vrot.slane %v4683_v52, %v4549_v58 }
 0x11b   :  { %v2288_v53 = vrot.slane %v4683_v52, %v4552_v59  ;;  %v4916_v63 = vcombine.low %v2927_v40, %v2934_v33  ;;  %v2968_v1 = vcombine.low %v2946_v46, %v2953_v8  ;;  %v2292_v19 = vrot.slane %v4683_v52, %v4555_v62  ;;  %3348 = vperm.xlu1 %4109, %v4834_v47  }
 0x11c   :  { %v2296_v36 = vrot.slane %v4683_v52, %v4560_v5  ;;  %v2969_v29 = vcombine.low %v2960_v20, %v2967_v22  ;;  %v2300_v37 = vrot.slane %v4683_v52, %v4563_v17  ;;  %v2985_v9 = vcombine.low %v2272_v60, %v2276_v56 }
 0x11d   :  { %5844 = vst [vmem:[#allocation17_spill] sm:$0xff] %v4916_v63  ;;  %v2986_v43 = vcombine.low %v2280_v32, %v2284_v51  ;;  %3503 = vperm.xlu0 %4108, %v4916_v63   ;;  %v2976_v55 = vrot.slane %v2968_v1, %v4566_v18  ;;  %v2987_v6 = vcombine.low %v2288_v53, %v2292_v19 }
 0x11e   :  { %v2304_v14 = vrot.slane %v4666_v31, %v4539_v38  ;;  %v2308_v28 = vrot.slane %v4666_v31, %v4543_v45  ;;  %v2983_v40 = vrot.slane %v2969_v29, %v4566_v18  ;;  %v2988_v13 = vcombine.low %v2296_v36, %v2300_v37 }
 0x11f   :  { %v2995_v21 = vrot.slane %v2985_v9, %v4566_v18  ;;  %v3002_v39 = vrot.slane %v2986_v43, %v4566_v18  ;;  %v3009_v46 = vrot.slane %v2987_v6, %v4566_v18  ;;  %v2312_v60 = vrot.slane %v4666_v31, %v4546_v57  ;;  %3351 = vperm.xlu1 %4109, %v4859_v27  }
 0x120   :  { %v2316_v33 = vrot.slane %v4666_v31, %v4549_v58  ;;  %v2320_v8 = vrot.slane %v4666_v31, %v4552_v59  ;;  %v4941_v20 = vcombine.low %v2976_v55, %v2983_v40  ;;  %v3016_v56 = vrot.slane %v2988_v13, %v4566_v18 }
 0x121   :  { %v3017_v22 = vcombine.low %v2995_v21, %v3002_v39  ;;  %v2324_v32 = vrot.slane %v4666_v31, %v4555_v62  ;;  %v2328_v51 = vrot.slane %v4666_v31, %v4560_v5  ;;  %v2332_v53 = vrot.slane %v4666_v31, %v4563_v17 }
 0x122   :  { %5845 = vst [vmem:[#allocation18_spill] sm:$0xff] %v4941_v20  ;;  %v3034_v1 = vcombine.low %v2304_v14, %v2308_v28  ;;  %v3035_v19 = vcombine.low %v2312_v60, %v2316_v33  ;;  %3506 = vperm.xlu0 %4108, %v4941_v20   ;;  %v3018_v36 = vcombine.low %v3009_v46, %v3016_v56 }
 0x123   :  { %v3025_v29 = vrot.slane %v3017_v22, %v4566_v18  ;;  %v3036_v37 = vcombine.low %v2320_v8, %v2324_v32  ;;  %v2336_v9 = vrot.slane %v4897_v41, %v4539_v38  ;;  %v3037_v43 = vcombine.low %v2328_v51, %v2332_v53  ;;  %3354 = vperm.xlu1 %4109, %v4889_v48  }
 0x124   :  { %v3044_v55 = vrot.slane %v3034_v1, %v4566_v18  ;;  %v3051_v6 = vrot.slane %v3035_v19, %v4566_v18  ;;  %v2340_v40 = vrot.slane %v4897_v41, %v4543_v45  ;;  %v3032_v14 = vrot.slane %v3018_v36, %v4566_v18 }
 0x125   :  { %v3058_v28 = vrot.slane %v3036_v37, %v4566_v18  ;;  %v2344_v13 = vrot.slane %v4897_v41, %v4546_v57  ;;  %v2348_v21 = vrot.slane %v4897_v41, %v4549_v58  ;;  %v3065_v39 = vrot.slane %v3037_v43, %v4566_v18 }
 0x126   :  { %v3066_v46 = vcombine.low %v3044_v55, %v3051_v6  ;;  %v2352_v60 = vrot.slane %v4897_v41, %v4552_v59  ;;  %v2356_v33 = vrot.slane %v4897_v41, %v4555_v62  ;;  %v4971_v8 = vcombine.low %v3025_v29, %v3032_v14 }
 0x127   :  { %v2360_v56 = vrot.slane %v4897_v41, %v4560_v5  ;;  %v2364_v22 = vrot.slane %v4897_v41, %v4563_v17  ;;  %v3083_v32 = vcombine.low %v2336_v9, %v2340_v40  ;;  %v3067_v51 = vcombine.low %v3058_v28, %v3065_v39  ;;  %3357 = vperm.xlu1 %4109, %v4916_v63  }
 0x128   :  { %5846 = vst [vmem:[#allocation19_spill] sm:$0xff] %v4971_v8  ;;  %v3074_v53 = vrot.slane %v3066_v46, %v4566_v18  ;;  %v3084_v1 = vcombine.low %v2344_v13, %v2348_v21  ;;  %v3085_v19 = vcombine.low %v2352_v60, %v2356_v33  ;;  %3509 = vperm.xlu0 %4108, %v4971_v8  }
 0x129   :  { %v3086_v36 = vcombine.low %v2360_v56, %v2364_v22  ;;  %v3093_v37 = vrot.slane %v3083_v32, %v4566_v18  ;;  %v2368_v29 = vrot.slane %v4694_v24, %v4539_v38  ;;  %v3081_v43 = vrot.slane %v3067_v51, %v4566_v18 }
 0x12a   :  { %v3100_v55 = vrot.slane %v3084_v1, %v4566_v18  ;;  %v3107_v9 = vrot.slane %v3085_v19, %v4566_v18  ;;  %v2372_v6 = vrot.slane %v4694_v24, %v4543_v45  ;;  %v2376_v14 = vrot.slane %v4694_v24, %v4546_v57 }
 0x12b   :  { %v3114_v40 = vrot.slane %v3086_v36, %v4566_v18  ;;  %v2380_v28 = vrot.slane %v4694_v24, %v4549_v58  ;;  %v2384_v13 = vrot.slane %v4694_v24, %v4552_v59  ;;  %v4995_v21 = vcombine.low %v3074_v53, %v3081_v43  ;;  %3360 = vperm.xlu1 %4109, %v4941_v20  }
 0x12c   :  { %v3115_v39 = vcombine.low %v3093_v37, %v3100_v55  ;;  %v2388_v46 = vrot.slane %v4694_v24, %v4555_v62  ;;  %v2392_v60 = vrot.slane %v4694_v24, %v4560_v5  ;;  %v2396_v56 = vrot.slane %v4694_v24, %v4563_v17 }
 0x12d   :  { %5847 = vst [vmem:[#allocation20_spill] sm:$0xff] %v4995_v21  ;;  %v3116_v33 = vcombine.low %v3107_v9, %v3114_v40  ;;  %v3132_v22 = vcombine.low %v2368_v29, %v2372_v6  ;;  %v3133_v32 = vcombine.low %v2376_v14, %v2380_v28  ;;  %3512 = vperm.xlu0 %4108, %v4995_v21  }
 0x12e   :  { %v3123_v51 = vrot.slane %v3115_v39, %v4566_v18  ;;  %v3134_v53 = vcombine.low %v2384_v13, %v2388_v46  ;;  %v3135_v19 = vcombine.low %v2392_v60, %v2396_v56  ;;  %v4064_v13 = vadd.f32 -8.0, %v4578_v54 }
 0x12f   :  { %v3130_v1 = vrot.slane %v3116_v33, %v4566_v18  ;;  %v3142_v36 = vrot.slane %v3132_v22, %v4566_v18  ;;  %v3149_v37 = vrot.slane %v3133_v32, %v4566_v18  ;;  %3363 = vperm.xlu1 %4109, %v4971_v8  }
 0x130   :  { %v3156_v43 = vrot.slane %v3134_v53, %v4566_v18  ;;  %v3163_v29 = vrot.slane %v3135_v19, %v4566_v18  ;;  %v401_v39 = vrot.slane %v4064_v13, %v4539_v38  ;;  %v405_v46 = vrot.slane %v4064_v13, %v4543_v45 }
 0x131   :  { %v5010_v55 = vcombine.low %v3123_v51, %v3130_v1  ;;  %v3164_v9 = vcombine.low %v3142_v36, %v3149_v37  ;;  %v409_v60 = vrot.slane %v4064_v13, %v4546_v57  ;;  %v413_v33 = vrot.slane %v4064_v13, %v4549_v58 }
 0x132   :  { %v3165_v6 = vcombine.low %v3156_v43, %v3163_v29  ;;  %v417_v56 = vrot.slane %v4064_v13, %v4552_v59  ;;  %v421_v54 = vrot.slane %v4064_v13, %v4555_v62  ;;  %v425_v22 = vrot.slane %v4064_v13, %v4560_v5 }
 0x133   :  { %5848 = vst [vmem:[#allocation21_spill] sm:$0xff] %v5010_v55  ;;  %3515 = vperm.xlu0 %4108, %v5010_v55   ;;  %v3172_v40 = vrot.slane %v3164_v9, %v4566_v18  ;;  %3366 = vperm.xlu1 %4109, %v4995_v21   ;;  %v429_v32 = vrot.slane %v4064_v13, %v4563_v17  ;;  %v4067_v53 = vadd.f32 -8.0, %v4618_v25 }
 0x134   :  { %v3179_v14 = vrot.slane %v3165_v6, %v4566_v18  ;;  %v910_v51 = vcombine.low %v401_v39, %v405_v46  ;;  %v911_v1 = vcombine.low %v409_v60, %v413_v33  ;;  %v912_v19 = vcombine.low %v417_v56, %v421_v54  ;;  %v5067_v54 = vpop.xlane.xlu1 %3963 }
 0x135   :  { %v913_v36 = vcombine.low %v425_v22, %v429_v32  ;;  %v497_v9 = vrot.slane %v4067_v53, %v4539_v38  ;;  %v501_v6 = vrot.slane %v4067_v53, %v4543_v45  ;;  %v513_v13 = vrot.slane %v4067_v53, %v4552_v59  ;;  %5850 = vst [vmem:[#allocation23_spill] sm:$0xff] %v5067_v54 }
 0x136   :  { %v5018_v28 = vcombine.low %v3172_v40, %v3179_v14  ;;  %v920_v37 = vrot.slane %v910_v51, %v4566_v18  ;;  %v927_v43 = vrot.slane %v911_v1, %v4566_v18  ;;  %v934_v29 = vrot.slane %v912_v19, %v4566_v18 }
 0x137   :  { %3369 = vperm.xlu1 %4109, %v5010_v55   ;;  %v941_v25 = vrot.slane %v913_v36, %v4566_v18  ;;  %v505_v40 = vrot.slane %v4067_v53, %v4546_v57  ;;  %v509_v14 = vrot.slane %v4067_v53, %v4549_v58  ;;  %v517_v39 = vrot.slane %v4067_v53, %v4555_v62 }
 0x138   :  { %5849 = vst [vmem:[#allocation22_spill] sm:$0xff] %v5018_v28  ;;  %3518 = vperm.xlu0 %4108, %v5018_v28   ;;  %v521_v46 = vrot.slane %v4067_v53, %v4560_v5  ;;  %v525_v60 = vrot.slane %v4067_v53, %v4563_v17  ;;  %v5063_v33 = vadd.f32 -8.0, %v4611_v4  ;;  %v942_v56 = vcombine.low %v920_v37, %v927_v43 }
 0x139   :  { %v943_v22 = vcombine.low %v934_v29, %v941_v25  ;;  %v1057_v32 = vcombine.low %v497_v9, %v501_v6  ;;  %v1058_v51 = vcombine.low %v505_v40, %v509_v14  ;;  %v4065_v1 = vadd.f32 -8.0, %v4557_v0 }
 0x13a   :  { %v1059_v19 = vcombine.low %v513_v13, %v517_v39  ;;  %v1060_v36 = vcombine.low %v521_v46, %v525_v60  ;;  %v4192_v53 = vmov -inf   ;;  %v950_v4 = vrot.slane %v942_v56, %v4566_v18 }
 0x13b   :  { %3372 = vperm.xlu1 %4109, %v5018_v28   ;;  %23 = vst [vmem:[#allocation3] sm:$0x1] %v4192_v53  ;;  %v957_v37 = vrot.slane %v943_v22, %v4566_v18  ;;  %v1067_v29 = vrot.slane %v1057_v32, %v4566_v18  ;;  %v1074_v0 = vrot.slane %v1058_v51, %v4566_v18  ;;  %v4066_v60 = vadd.f32 -8.0, %v4620_v26 }
 0x13c   :  { %3622 = vperm.xlu0 %4108, %v4615_v11   ;;  %v529_v9 = vrot.slane %v5063_v33, %v4539_v38  ;;  %v1081_v49 = vrot.slane %v1059_v19, %v4566_v18  ;;  %v1088_v25 = vrot.slane %v1060_v36, %v4566_v18  ;;  %v533_v6 = vrot.slane %v5063_v33, %v4543_v45 }
 0x13d   :  { %v433_v40 = vrot.slane %v4065_v1, %v4539_v38  ;;  %v437_v14 = vrot.slane %v4065_v1, %v4543_v45  ;;  %v441_v13 = vrot.slane %v4065_v1, %v4546_v57  ;;  %v445_v39 = vrot.slane %v4065_v1, %v4549_v58 }
 0x13e   :  { %v449_v46 = vrot.slane %v4065_v1, %v4552_v59  ;;  %v453_v56 = vrot.slane %v4065_v1, %v4555_v62  ;;  %v457_v22 = vrot.slane %v4065_v1, %v4560_v5  ;;  %v461_v32 = vrot.slane %v4065_v1, %v4563_v17 }
 0x13f   :  { %3619 = vperm.xlu1 %4109, %v4648_v23   ;;  %v5096_v51 = vadd.f32 -8.0, %v4644_v30  ;;  %v5098_v19 = vcombine.low %v950_v4, %v957_v37  ;;  %v5100_v36 = vcombine.low %v1067_v29, %v1074_v0  ;;  %v537_v26 = vrot.slane %v5063_v33, %v4546_v57 }
 0x140   :  { %3769 = vperm.xlu0 %4108, %v4615_v11   ;;  %v541_v53 = vrot.slane %v5063_v33, %v4549_v58  ;;  %v545_v54 = vrot.slane %v5063_v33, %v4552_v59  ;;  %v553_v30 = vrot.slane %v5063_v33, %v4560_v5  ;;  %v5114_v4 = vcombine.low %v1081_v49, %v1088_v25 }
 0x141   :  { %v557_v37 = vrot.slane %v5063_v33, %v4563_v17  ;;  %v5118_v29 = vcombine.low %v529_v9, %v533_v6  ;;  %v959_v0 = vcombine.low %v433_v40, %v437_v14  ;;  %v465_v41 = vrot.slane %v4066_v60, %v4539_v38 }
 0x142   :  { %v469_v49 = vrot.slane %v4066_v60, %v4543_v45  ;;  %v473_v25 = vrot.slane %v4066_v60, %v4546_v57  ;;  %v481_v9 = vrot.slane %v4066_v60, %v4552_v59  ;;  %v485_v6 = vrot.slane %v4066_v60, %v4555_v62 }
 0x143   :  { %3766 = vperm.xlu1 %4109, %v4648_v23   ;;  %v489_v40 = vrot.slane %v4066_v60, %v4560_v5  ;;  %v493_v14 = vrot.slane %v4066_v60, %v4563_v17  ;;  %v577_v52 = vrot.slane %v5096_v51, %v4552_v59  ;;  %v581_v31 = vrot.slane %v5096_v51, %v4555_v62 }
 0x144   :  { %3772 = vperm.xlu0 %4108, %v4733_v2  }
 0x145   :  { %v1011_v24 = vcombine.low %v489_v40, %v493_v14  ;;  %v1157_v34 = vcombine.low %v577_v52, %v581_v31 }
 0x147   :  { %3625 = vperm.xlu1 %4109, %v4733_v2  }
 0x148   :  { %3775 = vperm.xlu0 %4108, %v4811_v35  }
 0x14b   :  { %3628 = vperm.xlu1 %4109, %v4811_v35  }
 0x14c   :  { %3778 = vperm.xlu0 %4108, %v4692_v10  }
 0x14f   :  { %3631 = vperm.xlu1 %4109, %v4692_v10  }
 0x150   :  { %3781 = vperm.xlu0 %4108, %v4757_v44  }
 0x153   :  { %3634 = vperm.xlu1 %4109, %v4757_v44  }
 0x154   :  { %3784 = vperm.xlu0 %4108, %v4786_v15  }
 0x157   :  { %3637 = vperm.xlu1 %4109, %v4786_v15   ;;  %v962_v15 = vcombine.low %v457_v22, %v461_v32  ;;  %v565_v22 = vrot.slane %v5096_v51, %v4543_v45  ;;  %v569_v32 = vrot.slane %v5096_v51, %v4546_v57 }
 0x158   :  { %3787 = vperm.xlu0 %4108, %v4834_v47  }
 0x15b   :  { %3640 = vperm.xlu1 %4109, %v4834_v47   ;;  %v5074_v43 = vpop.permute.xlu1 %3330  ;;  %v961_v47 = vcombine.low %v449_v46, %v453_v56  ;;  %v561_v46 = vrot.slane %v5096_v51, %v4539_v38  ;;  %v5135_v56 = vadd.f32 -8.0, %v4650_v3 }
 0x15c   :  { %3790 = vperm.xlu0 %4108, %v4859_v27  }
 0x15d   :  { %v609_v31 = vrot.slane %v5135_v56, %v4552_v59  ;;  %v613_v52 = vrot.slane %v5135_v56, %v4555_v62 }
 0x15f   :  { %3643 = vperm.xlu1 %4109, %v4859_v27   ;;  %v960_v27 = vcombine.low %v441_v13, %v445_v39  ;;  %v1109_v39 = vcombine.low %v553_v30, %v557_v37  ;;  %v1008_v37 = vcombine.low %v465_v41, %v469_v49 }
 0x160   :  { %3793 = vperm.xlu0 %4108, %v4889_v48  }
 0x161   :  { %v976_v3 = vrot.slane %v960_v27, %v4566_v18  ;;  %v1137_v49 = vrot.slane %v1109_v39, %v4566_v18  ;;  %v593_v39 = vrot.slane %v5135_v56, %v4539_v38 }
 0x162   :  { %v5112_v1 = vpop.permute.xlu1 %3473 }
 0x163   :  { %3646 = vperm.xlu1 %4109, %v4889_v48   ;;  %v5121_v48 = vpop.xlane.xlu0 %3952 }
 0x164   :  { %3796 = vperm.xlu0 %4108, %v4916_v63   ;;  %5851 = vst [vmem:[#allocation24_spill] sm:$0xff] %v5121_v48  ;;  %v1107_v48 = vcombine.low %v537_v26, %v541_v53  ;;  %v983_v26 = vrot.slane %v961_v47, %v4566_v18  ;;  %v990_v53 = vrot.slane %v962_v15, %v4566_v18 }
 0x165   :  { %v589_v47 = vrot.slane %v5096_v51, %v4563_v17  ;;  %v1116_v15 = vrot.slane %v5118_v29, %v4566_v18 }
 0x166   :  { %v1123_v27 = vrot.slane %v1107_v48, %v4566_v18 }
 0x167   :  { %3649 = vperm.xlu1 %4109, %v4916_v63   ;;  %v549_v63 = vrot.slane %v5063_v33, %v4555_v62  ;;  %v477_v33 = vrot.slane %v4066_v60, %v4549_v58  ;;  %v969_v60 = vrot.slane %v959_v0, %v4566_v18  ;;  %v5151_v30 = vpop.permute.xlu0 %3327  ;;  %v585_v0 = vrot.slane %v5096_v51, %v4560_v5 }
 0x168   :  { %3799 = vperm.xlu0 %4108, %v4941_v20  }
 0x169   :  { %v1108_v13 = vcombine.low %v545_v54, %v549_v63  ;;  %v573_v63 = vrot.slane %v5096_v51, %v4549_v58  ;;  %v5145_v54 = vpop.permute.xlu1 %3476  ;;  %v1018_v51 = vrot.slane %v1008_v37, %v4566_v18  ;;  %v1138_v37 = vcombine.low %v1116_v15, %v1123_v27 }
 0x16a   :  { %v1206_v15 = vcombine.low %v609_v31, %v613_v52 }
 0x16b   :  { %3652 = vperm.xlu1 %4109, %v4941_v20   ;;  %v1010_v20 = vcombine.low %v481_v9, %v485_v6  ;;  %v1130_v41 = vrot.slane %v1108_v13, %v4566_v18  ;;  %v992_v9 = vcombine.low %v983_v26, %v990_v53  ;;  %v5168_v6 = vpop.permute.xlu0 %3485  ;;  %v1156_v48 = vcombine.low %v569_v32, %v573_v63 }
 0x16c   :  { %3802 = vperm.xlu0 %4108, %v4971_v8   ;;  %v1158_v13 = vcombine.low %v585_v0, %v589_v47  ;;  %v1097_v26 = vrot.slane %v5100_v36, %v4566_v18  ;;  %v1104_v53 = vrot.slane %v5114_v4, %v4566_v18 }
 0x16d   :  { %v1032_v14 = vrot.slane %v1010_v20, %v4566_v18  ;;  %v601_v20 = vrot.slane %v5135_v56, %v4546_v57  ;;  %v1006_v63 = vrot.slane %v992_v9, %v4566_v18  ;;  %v1139_v0 = vcombine.low %v1130_v41, %v1137_v49 }
 0x16e   :  { %v1186_v9 = vrot.slane %v1158_v13, %v4566_v18 }
 0x16f   :  { %3655 = vperm.xlu1 %4109, %v4971_v8   ;;  %v1009_v8 = vcombine.low %v473_v25, %v477_v33  ;;  %v1155_v25 = vcombine.low %v561_v46, %v565_v22  ;;  %v991_v33 = vcombine.low %v969_v60, %v976_v3  ;;  %v597_v46 = vrot.slane %v5135_v56, %v4543_v45 }
 0x170   :  { %3805 = vperm.xlu0 %4108, %v4995_v21   ;;  %v621_v22 = vrot.slane %v5135_v56, %v4563_v17 }
 0x171   :  { %v1025_v40 = vrot.slane %v1009_v8, %v4566_v18  ;;  %v617_v8 = vrot.slane %v5135_v56, %v4560_v5  ;;  %v999_v32 = vrot.slane %v991_v33, %v4566_v18  ;;  %v1172_v33 = vrot.slane %v1156_v48, %v4566_v18 }
 0x173   :  { %3658 = vperm.xlu1 %4109, %v4995_v21   ;;  %v1039_v21 = vrot.slane %v1011_v24, %v4566_v18  ;;  %v5174_v29 = vpop.permute.xlu1 %3333  ;;  %v605_v24 = vrot.slane %v5135_v56, %v4549_v58  ;;  %v1040_v60 = vcombine.low %v1018_v51, %v1025_v40  ;;  %v1165_v56 = vrot.slane %v1155_v25, %v4566_v18 }
 0x174   :  { %3808 = vperm.xlu0 %4108, %v5010_v55   ;;  %v1204_v51 = vcombine.low %v593_v39, %v597_v46  ;;  %v1007_v27 = vcombine.low %v999_v32, %v1006_v63  ;;  %v1207_v41 = vcombine.low %v617_v8, %v621_v22  ;;  %v1105_v25 = vcombine.low %v1097_v26, %v1104_v53 }
 0x175   :  { %v1041_v3 = vcombine.low %v1032_v14, %v1039_v21  ;;  %v1179_v21 = vrot.slane %v1157_v34, %v4566_v18  ;;  %v1205_v4 = vcombine.low %v601_v20, %v605_v24  ;;  %v1146_v40 = vrot.slane %v1138_v37, %v4566_v18 }
 0x176   :  { %v1153_v34 = vrot.slane %v1139_v0, %v4566_v18  ;;  %v1187_v14 = vcombine.low %v1165_v56, %v1172_v33  ;;  %v1214_v13 = vrot.slane %v1204_v51, %v4566_v18  ;;  %v1228_v20 = vrot.slane %v1206_v15, %v4566_v18 }
 0x177   :  { %3661 = vperm.xlu1 %4109, %v5010_v55   ;;  %v5208_v36 = vpop.permute.xlu1 %3479  ;;  %v1055_v49 = vrot.slane %v1041_v3, %v4566_v18  ;;  %v1188_v48 = vcombine.low %v1179_v21, %v1186_v9  ;;  %v1221_v46 = vrot.slane %v1205_v4, %v4566_v18  ;;  %v1235_v24 = vrot.slane %v1207_v41, %v4566_v18 }
 0x178   :  { %3811 = vperm.xlu0 %4108, %v5018_v28   ;;  %v5201_v47 = vpop.permute.xlu0 %3488  ;;  %v1154_v52 = vcombine.low %v1146_v40, %v1153_v34  ;;  %v1195_v8 = vrot.slane %v1187_v14, %v4566_v18  ;;  %v5852_v56 = vlaneseq }
 0x179   :  { %v1202_v22 = vrot.slane %v1188_v48, %v4566_v18  ;;  %v1236_v32 = vcombine.low %v1214_v13, %v1221_v46  ;;  %v1237_v63 = vcombine.low %v1228_v20, %v1235_v24 }
 0x17a   :  { %v5233_v33 = vand.u32 127, %v5852_v56 }
 0x17b   :  { %3664 = vperm.xlu1 %4109, %v5018_v28   ;;  %v1203_v26 = vcombine.low %v1195_v8, %v1202_v22  ;;  %v1244_v53 = vrot.slane %v1236_v32, %v4566_v18  ;;  %v1251_v37 = vrot.slane %v1237_v63, %v4566_v18 }
 0x17c   :  { %1695 = vperm.xlu0 %4108, %v5098_v19   ;;  %v1048_v19 = vrot.slane %v1040_v60, %v4566_v18  ;;  %v1755_v4 = vadd.s32 4294967280, %v5233_v33  ;;  %v1762_v15 = vadd.s32 4294967272, %v5233_v33  ;;  %v1776_v48 = vadd.s32 4294967256, %v5233_v33 }
 0x17d   :  { %v5216_v39 = vpop.permute.xlu0 %3491  ;;  %v1252_v9 = vcombine.low %v1244_v53, %v1251_v37  ;;  %v1783_v24 = vadd.s32 4294967248, %v5233_v33  ;;  %v1790_v32 = vadd.s32 4294967240, %v5233_v33  ;;  %v1797_v37 = vadd.s32 4294967232, %v5233_v33 }
 0x17e   :  { %v1056_v31 = vcombine.low %v1048_v19, %v1055_v49  ;;  %v1769_v19 = vadd.s32 4294967264, %v5233_v33  ;;  %v5254_v49 = vsub.s32 %v1755_v4, %v4532_v16  ;;  %v5263_v40 = vsub.s32 %v1762_v15, %v4532_v16 }
 0x17f   :  { %1698 = vperm.xlu1 %4109, %v1007_v27   ;;  %v5293_v63 = vsub.s32 %v1783_v24, %v4532_v16  ;;  %v5302_v56 = vsub.s32 %v1790_v32, %v4532_v16  ;;  %v1804_v15 = vadd.s32 4294967224, %v5233_v33 }
 0x180   :  { %3182 = vperm.xlu0 %4108, %v4648_v23   ;;  %v3532_v34 = vrot.slane %v5208_v36, %v5254_v49 }
 0x181   :  { %v5329_v24 = vsub.s32 %v1804_v15, %v4532_v16 }
 0x182   :  { %v5221_v23 = vpop.permute.xlu1 %3336 }
 0x183   :  { %1701 = vperm.xlu1 %4109, %v1056_v31  }
 0x184   :  { %1704 = vperm.xlu0 %4108, %v1105_v25  }
 0x186   :  { %v3483_v60 = vpop.permute.xlu1 %3482 }
 0x187   :  { %3185 = vperm.xlu1 %4109, %v4615_v11   ;;  %v1748_v11 = vadd.s32 4294967288, %v5233_v33  ;;  %v3537_v13 = vrot.slane %v3483_v60, %v5263_v40 }
 0x188   :  { %1707 = vperm.xlu0 %4108, %v1154_v52   ;;  %v5225_v3 = vpop.permute.xlu0 %3494 }
 0x18a   :  { %v5230_v0 = vpop.permute.xlu1 %3339 }
 0x18b   :  { %3188 = vperm.xlu1 %4109, %v4733_v2   ;;  %v5249_v2 = vsub.s32 %v1748_v11, %v4532_v16 }
 0x18c   :  { %1710 = vperm.xlu0 %4108, %v1203_v26  }
 0x18d   :  { %v5236_v21 = vpop.permute.xlu0 %3497  ;;  %v3527_v25 = vrot.slane %v5145_v54, %v5249_v2  ;;  %v5276_v54 = vsub.s32 %v1769_v19, %v4532_v16 }
 0x18e   :  { %v5238_v51 = vpop.permute.xlu1 %3342 }
 0x18f   :  { %3191 = vperm.xlu1 %4109, %v4811_v35   ;;  %v5258_v35 = vsub.s32 %v5233_v33, %v4532_v16  ;;  %v3542_v8 = vrot.slane %v5168_v6, %v5276_v54 }
 0x190   :  { %1713 = vperm.xlu0 %4108, %v1252_v9   ;;  %v3552_v9 = vrot.slane %v5216_v39, %v5293_v63  ;;  %v1818_v39 = vadd.s32 4294967208, %v5233_v33 }
 0x192   :  { %v5246_v41 = vpop.permute.xlu1 %3345 }
 0x193   :  { %v5244_v27 = vpop.permute.xlu0 %3500  ;;  %3194 = vperm.xlu1 %4109, %v4692_v10   ;;  %v3523_v10 = vrot.slane %v5112_v1, %v5258_v35  ;;  %v5284_v1 = vsub.s32 %v1776_v48, %v4532_v16  ;;  %v1825_v48 = vadd.s32 4294967200, %v5233_v33 }
 0x195   :  { %v3528_v20 = vsel %vm1753_vm4, %v3527_v25, %v3523_v10  ;;  %v3547_v53 = vrot.slane %v5201_v47, %v5284_v1  ;;  %v5313_v47 = vsub.s32 %v1797_v37, %v4532_v16  ;;  %v1811_v25 = vadd.s32 4294967216, %v5233_v33 }
 0x196   :  { %v5267_v14 = vpop.permute.xlu1 %3348  ;;  %v3533_v36 = vsel %vm1760_vm5, %v3532_v34, %v3528_v20  ;;  %v3557_v34 = vrot.slane %v5225_v3, %v5302_v56  ;;  %v3381_v10 = vrot.slane %v5074_v43, %v5249_v2  ;;  %v3377_v20 = vrot.slane %v5151_v30, %v5258_v35 }
 0x197   :  { %v3538_v52 = vsel %vm1767_vm6, %v3537_v13, %v3533_v36  ;;  %v1832_v3 = vadd.s32 4294967192, %v5233_v33  ;;  %v3386_v43 = vrot.slane %v5174_v29, %v5254_v49  ;;  %v5337_v32 = vsub.s32 %v1811_v25, %v4532_v16 }
 0x198   :  { %v5273_v46 = vpop.permute.xlu0 %3503  ;;  %v3543_v60 = vsel %vm5830_vm7, %v3542_v8, %v3538_v52  ;;  %v3562_v8 = vrot.slane %v5236_v21, %v5313_v47  ;;  %v3391_v30 = vrot.slane %v5221_v23, %v5263_v40  ;;  %v3396_v29 = vrot.slane %v5230_v0, %v5276_v54 }
 0x199   :  { %v3548_v6 = vsel %vm5829_vm8, %v3547_v53, %v3543_v60  ;;  %v1839_v60 = vadd.s32 4294967184, %v5233_v33  ;;  %v5343_v53 = vsub.s32 %v1818_v39, %v4532_v16  ;;  %v5349_v21 = vsub.s32 %v1825_v48, %v4532_v16 }
 0x19a   :  { %v5281_v31 = vpop.permute.xlu1 %3351  ;;  %v3553_v19 = vsel %vm1788_vm9, %v3552_v9, %v3548_v6  ;;  %v1846_v6 = vadd.s32 4294967176, %v5233_v33  ;;  %v3382_v15 = vsel %vm1753_vm4, %v3381_v10, %v3377_v20  ;;  %v3567_v23 = vrot.slane %v5244_v27, %v5329_v24 }
 0x19b   :  { %v3558_v36 = vsel %vm1795_vm10, %v3557_v34, %v3553_v19  ;;  %v3401_v19 = vrot.slane %v5238_v51, %v5284_v1  ;;  %v5358_v25 = vsub.s32 %v1832_v3, %v4532_v16  ;;  %v3387_v34 = vsel %vm1760_vm5, %v3386_v43, %v3382_v15 }
 0x19c   :  { %v3563_v37 = vsel %vm1802_vm11, %v3562_v8, %v3558_v36  ;;  %v3572_v0 = vrot.slane %v5273_v46, %v5337_v32  ;;  %v3406_v33 = vrot.slane %v5246_v41, %v5293_v63  ;;  %v5366_v39 = vsub.s32 %v1839_v60, %v4532_v16 }
 0x19d   :  { %v5289_v22 = vpop.permute.xlu0 %3506  ;;  %v3392_v27 = vsel %vm1767_vm6, %v3391_v30, %v3387_v34  ;;  %v3568_v48 = vsel %vm1809_vm12, %v3567_v23, %v3563_v37  ;;  %v3411_v20 = vrot.slane %v5267_v14, %v5302_v56  ;;  %v3416_v41 = vrot.slane %v5281_v31, %v5313_v47 }
 0x19e   :  { %v5296_v26 = vpop.permute.xlu1 %3354  ;;  %v3577_v51 = vrot.slane %v5289_v22, %v5343_v53  ;;  %v3397_v36 = vsel %vm5830_vm7, %v3396_v29, %v3392_v27  ;;  %v5384_v60 = vsub.s32 %v1846_v6, %v4532_v16  ;;  %v3573_v14 = vsel %vm1816_vm13, %v3572_v0, %v3568_v48 }
 0x19f   :  { %v3402_v43 = vsel %vm5829_vm8, %v3401_v19, %v3397_v36  ;;  %v3421_v22 = vrot.slane %v5296_v26, %v5329_v24  ;;  %vm1844_vm8 = vcmask 982912   ;;  %vm1851_vm7 = vcmask 1048512  }
 0x1a0   :  { %v3407_v30 = vsel %vm1788_vm9, %v3406_v33, %v3402_v43  ;;  %v3578_v37 = vsel %vm1823_vm14, %v3577_v51, %v3573_v14 }
 0x1a1   :  { %v3412_v29 = vsel %vm1795_vm10, %v3411_v20, %v3407_v30 }
 0x1a2   :  { %v5309_v4 = vpop.permute.xlu1 %3357 }
 0x1a3   :  { %v5307_v11 = vpop.permute.xlu0 %3509  ;;  %v3426_v31 = vrot.slane %v5309_v4, %v5337_v32 }
 0x1a4   :  { %v3582_v46 = vrot.slane %v5307_v11, %v5349_v21 }
 0x1a6   :  { %v5323_v13 = vpop.permute.xlu1 %3360  ;;  %v3583_v16 = vsel %vm1830_vm15, %v3582_v46, %v3578_v37 }
 0x1a7   :  { %v3431_v26 = vrot.slane %v5323_v13, %v5343_v53 }
 0x1a8   :  { %v3513_v52 = vpop.permute.xlu0 %3512 }
 0x1a9   :  { %v3587_v8 = vrot.slane %v3513_v52, %v5358_v25  ;;  %v3417_v52 = vsel %vm1802_vm11, %v3416_v41, %v3412_v29  ;;  %v3325_v29 = vld [vmem:[#allocation3] sm:$0x1] }
 0x1aa   :  { %v3364_v9 = vpop.permute.xlu1 %3363  ;;  %v3422_v4 = vsel %vm1809_vm12, %v3421_v22, %v3417_v52 }
 0x1ab   :  { %v3436_v15 = vrot.slane %v3364_v9, %v5349_v21  ;;  %v3588_v19 = vsel %vm1837_vm0, %v3587_v8, %v3583_v16  ;;  %v3427_v13 = vsel %vm1816_vm13, %v3426_v31, %v3422_v4 }
 0x1ac   :  { %v3432_v48 = vsel %vm1823_vm14, %v3431_v26, %v3427_v13 }
 0x1ad   :  { %v3437_v20 = vsel %vm1830_vm15, %v3436_v15, %v3432_v48 }
 0x1ae   :  { %v3516_v10 = vpop.permute.xlu0 %3515  ;;  %v3367_v3 = vpop.permute.xlu1 %3366 }
 0x1af   :  { %v3592_v11 = vrot.slane %v3516_v10, %v5366_v39  ;;  %v3441_v0 = vrot.slane %v3367_v3, %v5358_v25  ;;  %v3471_v3 = vld [vmem:[#allocation3 + $0x1] sm:$0x1] }
 0x1b1   :  { %v3593_v33 = vsel %vm1844_vm8, %v3592_v11, %v3588_v19  ;;  %v3442_v46 = vsel %vm1837_vm0, %v3441_v0, %v3437_v20 }
 0x1b2   :  { %v3370_v23 = vpop.permute.xlu1 %3369 }
 0x1b3   :  { %v3519_v6 = vpop.permute.xlu0 %3518  ;;  %v3446_v10 = vrot.slane %v3370_v23, %v5366_v39  ;;  %v4071_v23 = vadd.f32 -8.0, %v4646_v42 }
 0x1b4   :  { %v3597_v34 = vrot.slane %v3519_v6, %v5384_v60 }
 0x1b5   :  { %v3447_v8 = vsel %vm1844_vm8, %v3446_v10, %v3442_v46  ;;  %v625_v0 = vrot.slane %v4071_v23, %v4539_v38  ;;  %v629_v13 = vrot.slane %v4071_v23, %v4543_v45  ;;  %v633_v10 = vrot.slane %v4071_v23, %v4546_v57 }
 0x1b6   :  { %v3598_v27 = vsel %vm1851_vm7, %v3597_v34, %v3593_v33  ;;  %v3373_v36 = vpop.permute.xlu1 %3372  ;;  %v641_v42 = vrot.slane %v4071_v23, %v4552_v59  ;;  %v645_v20 = vrot.slane %v4071_v23, %v4555_v62  ;;  %v653_v46 = vrot.slane %v4071_v23, %v4563_v17 }
 0x1b7   :  { %v3605_v9 = vrot.slane %v3598_v27, %v4566_v18  ;;  %v5408_v51 = vpop.permute.xlu0 %3622  ;;  %v3451_v41 = vrot.slane %v3373_v36, %v5384_v60  ;;  %v637_v27 = vrot.slane %v4071_v23, %v4549_v58  ;;  %v649_v36 = vrot.slane %v4071_v23, %v4560_v5 }
 0x1b9   :  { %v3612_v43 = vrot.slane %v3605_v9, %v4566_v18  ;;  %v3452_v22 = vsel %vm1851_vm7, %v3451_v41, %v3447_v8 }
 0x1ba   :  { %v3459_v11 = vrot.slane %v3452_v22, %v4566_v18  ;;  %v5419_v31 = vpop.permute.xlu1 %3619  ;;  %v1253_v22 = vcombine.low %v625_v0, %v629_v13 }
 0x1bb   :  { %v3614_v14 = vsel %vm365_vm1, %v3612_v43, inf  ;;  %v3770_v30 = vpop.permute.xlu0 %3769 }
 0x1bc   :  { %v3615_v37 = vmin.f32 %v3471_v3, %v3614_v14  ;;  %v3466_v26 = vrot.slane %v3459_v11, %v4566_v18  ;;  %v1254_v14 = vcombine.low %v633_v10, %v637_v27  ;;  %v1255_v11 = vcombine.low %v641_v42, %v645_v20 }
 0x1bd   :  { %v3820_v42 = vrot.slane %v3770_v30, %v5249_v2 }
 0x1be   :  { %3616 = vst [vmem:[#allocation3 + $0x1] sm:$0x1] %v3615_v37  ;;  %v3468_v52 = vsel %vm5834_vm2, %v3466_v26, -inf  ;;  %v3767_v6 = vpop.permute.xlu1 %3766  ;;  %v1256_v37 = vcombine.low %v649_v36, %v653_v46  ;;  %v1263_v26 = vrot.slane %v1253_v22, %v4566_v18  ;;  %vm5854_vm2 = vcmask 392512  }
 0x1bf   :  { %v3773_v16 = vpop.permute.xlu0 %3772  ;;  %v3469_v15 = vmax.f32 %v3325_v29, %v3468_v52  ;;  %v1270_v52 = vrot.slane %v1254_v14, %v4566_v18 }
 0x1c0   :  { %v1284_v23 = vrot.slane %v1256_v37, %v4566_v18  ;;  %v3825_v36 = vrot.slane %v3773_v16, %v5254_v49 }
 0x1c1   :  { %3470 = vst [vmem:[#allocation3] sm:$0x1] %v3469_v15  ;;  %v1277_v15 = vrot.slane %v1255_v11, %v4566_v18 }
 0x1c2   :  { %v5425_v4 = vpop.permute.xlu1 %3625 }
 0x1c3   :  { %v3776_v19 = vpop.permute.xlu0 %3775  ;;  %v1286_v28 = vcombine.low %v1277_v15, %v1284_v23 }
 0x1c5   :  { %v3939_v34 = vld [vmem:[#allocation3 + $0x1] sm:$0x1]  ;;  %v1300_v10 = vrot.slane %v1286_v28, %v4566_v18 }
 0x1c6   :  { %v3940_v33 = vsel %vm5833_vm3, %v3939_v34, inf  ;;  %v5432_v9 = vpop.permute.xlu1 %3628 }
 0x1c7   :  { %v3779_v48 = vpop.permute.xlu0 %3778  ;;  %3941 = vmin.xlane.f32.xlu0 %v3940_v33 }
 0x1c8   :  { %v3927_v41 = vld [vmem:[#allocation3] sm:$0x1]  ;;  %v3835_v30 = vrot.slane %v3779_v48, %v5276_v54  ;;  %v3678_v48 = vrot.slane %v5425_v4, %v5254_v49 }
 0x1c9   :  { %v3929_v3 = vsel %vm5833_vm3, %v3927_v41, -inf  ;;  %v1285_v41 = vcombine.low %v1263_v26, %v1270_v52  ;;  %vm5853_vm3 = vcmask 326912  }
 0x1ca   :  { %v5439_v8 = vpop.permute.xlu1 %3631  ;;  %3930 = vmax.xlane.f32.xlu1 %v3929_v3  ;;  %v3816_v3 = vrot.slane %v3767_v6, %v5258_v35  ;;  %v3830_v6 = vrot.slane %v3776_v19, %v5263_v40  ;;  %v3669_v19 = vrot.slane %v5419_v31, %v5258_v35 }
 0x1cb   :  { %v3782_v43 = vpop.permute.xlu0 %3781  ;;  %v1293_v13 = vrot.slane %v1285_v41, %v4566_v18 }
 0x1cc   :  { %v3821_v20 = vsel %vm1753_vm4, %v3820_v42, %v3816_v3  ;;  %v3840_v23 = vrot.slane %v3782_v43, %v5284_v1  ;;  %v3673_v42 = vrot.slane %v5408_v51, %v5249_v2  ;;  %v3683_v43 = vrot.slane %v5432_v9, %v5263_v40 }
 0x1cd   :  { %v1301_v22 = vcombine.low %v1293_v13, %v1300_v10  ;;  %v3826_v11 = vsel %vm1760_vm5, %v3825_v36, %v3821_v20  ;;  %v3688_v36 = vrot.slane %v5439_v8, %v5276_v54 }
 0x1ce   :  { %v3635_v34 = vpop.permute.xlu1 %3634  ;;  %v3831_v28 = vsel %vm1767_vm6, %v3830_v6, %v3826_v11  ;;  %v3674_v11 = vsel %vm1753_vm4, %v3673_v42, %v3669_v19 }
 0x1cf   :  { %v3785_v29 = vpop.permute.xlu0 %3784  ;;  %v3836_v52 = vsel %vm5853_vm3, %v3835_v30, %v3831_v28  ;;  %v3693_v51 = vrot.slane %v3635_v34, %v5284_v1 }
 0x1d0   :  { %v3841_v41 = vsel %vm5854_vm2, %v3840_v23, %v3836_v52  ;;  %vm5855_vm2 = vmmov %vm5853_vm3  ;;  %vm5856_vm3 = vcmask 392512  }
 0x1d2   :  { %v3638_v55 = vpop.permute.xlu1 %3637 }
 0x1d3   :  { %v3788_v33 = vpop.permute.xlu0 %3787  ;;  %v3698_v9 = vrot.slane %v3638_v55, %v5293_v63 }
 0x1d4   :  { %v3850_v20 = vrot.slane %v3788_v33, %v5302_v56  ;;  %v3679_v33 = vsel %vm1760_vm5, %v3678_v48, %v3674_v11 }
 0x1d6   :  { %v3641_v27 = vpop.permute.xlu1 %3640 }
 0x1d7   :  { %v3791_v0 = vpop.permute.xlu0 %3790  ;;  %v3703_v30 = vrot.slane %v3641_v27, %v5302_v56 }
 0x1da   :  { %v3644_v14 = vpop.permute.xlu1 %3643 }
 0x1db   :  { %v3794_v46 = vpop.permute.xlu0 %3793  ;;  %3197 = vperm.xlu1 %4109, %v4757_v44   ;;  %v3845_v44 = vrot.slane %v3785_v29, %v5293_v63  ;;  %v3855_v29 = vrot.slane %v3791_v0, %v5313_v47  ;;  %v3684_v0 = vsel %vm1767_vm6, %v3683_v43, %v3679_v33  ;;  %v3708_v34 = vrot.slane %v3644_v14, %v5313_v47 }
 0x1dc   :  { %v3860_v4 = vrot.slane %v3794_v46, %v5329_v24  ;;  %v3689_v23 = vsel %vm5855_vm2, %v3688_v36, %v3684_v0  ;;  %vm5857_vm2 = vcmp.eq.s32.totalorder %v4467_v50, 1 }
 0x1dd   :  { %1716 = vperm.xlu0 %4108, %v1301_v22   ;;  %v3846_v10 = vsel %vm1788_vm9, %v3845_v44, %v3841_v41  ;;  %v3694_v55 = vsel %vm5856_vm3, %v3693_v51, %v3689_v23  ;;  %vm5860_vm3 = vcmask 326912  }
 0x1de   :  { %v3647_v26 = vpop.permute.xlu1 %3646  ;;  %v3851_v6 = vsel %vm1795_vm10, %v3850_v20, %v3846_v10  ;;  %v3699_v10 = vsel %vm1788_vm9, %v3698_v9, %v3694_v55 }
 0x1df   :  { %v3797_v37 = vpop.permute.xlu0 %3796  ;;  %v3856_v52 = vsel %vm1802_vm11, %v3855_v29, %v3851_v6  ;;  %v3704_v42 = vsel %vm1795_vm10, %v3703_v30, %v3699_v10 }
 0x1e0   :  { %v3865_v28 = vrot.slane %v3797_v37, %v5337_v32  ;;  %v3861_v37 = vsel %vm1809_vm12, %v3860_v4, %v3856_v52  ;;  %v3709_v29 = vsel %vm1802_vm11, %v3708_v34, %v3704_v42  ;;  %v3764_v34 = vld [vmem:[#allocation3 + $0x3] sm:$0x1] }
 0x1e2   :  { %v3650_v16 = vpop.permute.xlu1 %3649  ;;  %v3866_v27 = vsel %vm1816_vm13, %v3865_v28, %v3861_v37 }
 0x1e3   :  { %v3800_v15 = vpop.permute.xlu0 %3799 }
 0x1e4   :  { %v3870_v8 = vrot.slane %v3800_v15, %v5343_v53  ;;  %v3713_v15 = vrot.slane %v3647_v26, %v5329_v24 }
 0x1e6   :  { %v3653_v13 = vpop.permute.xlu1 %3652  ;;  %v3871_v14 = vsel %vm1823_vm14, %v3870_v8, %v3866_v27  ;;  %v3714_v6 = vsel %vm1809_vm12, %v3713_v15, %v3709_v29 }
 0x1e7   :  { %v3803_v3 = vpop.permute.xlu0 %3802  ;;  %v3723_v20 = vrot.slane %v3653_v13, %v5343_v53 }
 0x1e8   :  { %v3875_v46 = vrot.slane %v3803_v3, %v5349_v21  ;;  %v3718_v3 = vrot.slane %v3650_v16, %v5337_v32 }
 0x1ea   :  { %v3656_v31 = vpop.permute.xlu1 %3655  ;;  %v3876_v43 = vsel %vm1830_vm15, %v3875_v46, %v3871_v14  ;;  %v3719_v13 = vsel %vm1816_vm13, %v3718_v3, %v3714_v6  ;;  %v4072_v46 = vadd.f32 -8.0, %v4655_v12  ;;  %v3617_v12 = vld [vmem:[#allocation3 + $0x2] sm:$0x1] }
 0x1eb   :  { %v3806_v22 = vpop.permute.xlu0 %3805  ;;  %v3728_v26 = vrot.slane %v3656_v31, %v5349_v21  ;;  %v3724_v9 = vsel %vm1823_vm14, %v3723_v20, %v3719_v13 }
 0x1ec   :  { %v3880_v19 = vrot.slane %v3806_v22, %v5358_v25  ;;  %v657_v42 = vrot.slane %v4072_v46, %v4539_v38  ;;  %v661_v20 = vrot.slane %v4072_v46, %v4543_v45  ;;  %v665_v29 = vrot.slane %v4072_v46, %v4546_v57 }
 0x1ed   :  { %v3729_v8 = vsel %vm1830_vm15, %v3728_v26, %v3724_v9  ;;  %v673_v26 = vrot.slane %v4072_v46, %v4552_v59 }
 0x1ee   :  { %v3659_v44 = vpop.permute.xlu1 %3658  ;;  %v3881_v11 = vsel %vm1837_vm0, %v3880_v19, %v3876_v43 }
 0x1ef   :  { %v3809_v41 = vpop.permute.xlu0 %3808  ;;  %v3733_v4 = vrot.slane %v3659_v44, %v5358_v25 }
 0x1f0   :  { %v3885_v48 = vrot.slane %v3809_v41, %v5366_v39 }
 0x1f1   :  { %v3734_v52 = vsel %vm1837_vm0, %v3733_v4, %v3729_v8  ;;  %v681_v4 = vrot.slane %v4072_v46, %v4560_v5 }
 0x1f2   :  { %v3662_v22 = vpop.permute.xlu1 %3661  ;;  %v3886_v51 = vsel %vm1844_vm8, %v3885_v48, %v3881_v11 }
 0x1f3   :  { %v3812_v36 = vpop.permute.xlu0 %3811  ;;  %v3738_v33 = vrot.slane %v3662_v22, %v5366_v39 }
 0x1f4   :  { %v3890_v16 = vrot.slane %v3812_v36, %v5384_v60  ;;  %v669_v36 = vrot.slane %v4072_v46, %v4549_v58 }
 0x1f5   :  { %v3739_v44 = vsel %vm1844_vm8, %v3738_v33, %v3734_v52 }
 0x1f6   :  { %v3891_v28 = vsel %vm1851_vm7, %v3890_v16, %v3886_v51  ;;  %v3665_v30 = vpop.permute.xlu1 %3664  ;;  %v677_v16 = vrot.slane %v4072_v46, %v4555_v62  ;;  %v685_v51 = vrot.slane %v4072_v46, %v4563_v17  ;;  %v1303_v8 = vcombine.low %v665_v29, %v669_v36 }
 0x1f7   :  { %v3898_v31 = vrot.slane %v3891_v28, %v4566_v18  ;;  %v1696_v0 = vpop.permute.xlu0 %1695  ;;  %v3743_v23 = vrot.slane %v3665_v30, %v5384_v60  ;;  %v4073_v28 = vadd.f32 -8.0, %v4652_v61  ;;  %v5541_v46 = vadd.f32 -8.0, %v4658_v7 }
 0x1f8   :  { %v1747_v48 = vrot.slane %v1696_v0, %v5258_v35 }
 0x1f9   :  { %v3905_v41 = vrot.slane %v3898_v31, %v4566_v18  ;;  %v3744_v37 = vsel %vm1851_vm7, %v3743_v23, %v3739_v44  ;;  %v1302_v31 = vcombine.low %v657_v42, %v661_v20  ;;  %v693_v29 = vrot.slane %v4073_v28, %v4543_v45 }
 0x1fa   :  { %v3751_v15 = vrot.slane %v3744_v37, %v4566_v18  ;;  %v1699_v27 = vpop.permute.xlu1 %1698  ;;  %v697_v36 = vrot.slane %v4073_v28, %v4546_v57 }
 0x1fb   :  { %v3907_v55 = vsel %vm365_vm1, %v3905_v41, 0.0  ;;  %v3183_v19 = vpop.permute.xlu0 %3182  ;;  %v1752_v3 = vrot.slane %v1699_v27, %v5249_v2  ;;  %v1305_v41 = vcombine.low %v681_v4, %v685_v51  ;;  %v5859_v27 = vld [vmem:[#allocation9_spill] sm:$0xff]  ;;  %v709_v4 = vrot.slane %v4073_v28, %v4555_v62 }
 0x1fc   :  { %v3909_v10 = vadd.f32 %v3907_v55, %v3764_v34  ;;  %v3758_v14 = vrot.slane %v3751_v15, %v4566_v18  ;;  %v1304_v34 = vcombine.low %v673_v26, %v677_v16  ;;  %v3232_v44 = vrot.slane %v3183_v19, %v5258_v35  ;;  %v5858_v55 = vld [vmem:[#allocation8_spill] sm:$0xff] }
 0x1fd   :  { %v1754_v43 = vsel %vm1753_vm4, %v1752_v3, %v1747_v48  ;;  %v4074_v15 = vadd.f32 -8.0, %v5858_v55  ;;  %v1312_v3 = vrot.slane %v1302_v31, %v4566_v18  ;;  %v1319_v19 = vrot.slane %v1303_v8, %v4566_v18  ;;  %v5865_v55 = vld [vmem:[#allocation11_spill] sm:$0xff] }
 0x1fe   :  { %3910 = vst [vmem:[#allocation3 + $0x3] sm:$0x1] %v3909_v10  ;;  %v3760_v11 = vsel %vm5857_vm2, %v3758_v14, 0.0  ;;  %v1702_v6 = vpop.permute.xlu1 %1701  ;;  %v5548_v10 = vadd.f32 -8.0, %v5859_v27  ;;  %vm5861_vm2 = vcmask 1040384   ;;  %v1326_v20 = vrot.slane %v1304_v34, %v4566_v18  ;;  %v5864_v34 = vld [vmem:[#allocation10_spill] sm:$0xff] }
 0x1ff   :  { %v1705_v22 = vpop.permute.xlu0 %1704  ;;  %v3762_v13 = vadd.f32 %v3760_v11, %v3617_v12  ;;  %v1759_v33 = vrot.slane %v1702_v6, %v5254_v49  ;;  %v689_v12 = vrot.slane %v4073_v28, %v4539_v38  ;;  %v701_v11 = vrot.slane %v4073_v28, %v4549_v58 }
 0x200   :  { %v1766_v9 = vrot.slane %v1705_v22, %v5263_v40  ;;  %v705_v6 = vrot.slane %v4073_v28, %v4552_v59  ;;  %v713_v51 = vrot.slane %v4073_v28, %v4560_v5  ;;  %v5583_v27 = vadd.f32 -8.0, %v5865_v55 }
 0x201   :  { %3763 = vst [vmem:[#allocation3 + $0x2] sm:$0x1] %v3762_v13  ;;  %v1761_v0 = vsel %vm1760_vm5, %v1759_v33, %v1754_v43  ;;  %v1333_v43 = vrot.slane %v1305_v41, %v4566_v18  ;;  %v717_v13 = vrot.slane %v4073_v28, %v4563_v17  ;;  %v721_v33 = vrot.slane %v4074_v15, %v4539_v38 }
 0x202   :  { %v1768_v52 = vsel %vm1767_vm6, %v1766_v9, %v1761_v0  ;;  %v3186_v23 = vpop.permute.xlu1 %3185  ;;  %v725_v0 = vrot.slane %v4074_v15, %v4543_v45  ;;  %v741_v28 = vrot.slane %v4074_v15, %v4555_v62  ;;  %v4076_v41 = vadd.f32 -8.0, %v5864_v34 }
 0x203   :  { %v1708_v30 = vpop.permute.xlu0 %1707  ;;  %v3236_v37 = vrot.slane %v3186_v23, %v5249_v2  ;;  %v737_v23 = vrot.slane %v4074_v15, %v4552_v59 }
 0x204   :  { %v1773_v61 = vrot.slane %v1708_v30, %v5276_v54  ;;  %v729_v30 = vrot.slane %v4074_v15, %v4546_v57  ;;  %v785_v34 = vrot.slane %v4076_v41, %v4539_v38  ;;  %v801_v55 = vrot.slane %v4076_v41, %v4552_v59 }
 0x205   :  { %v3987_v48 = vld [vmem:[#allocation3 + $0x3] sm:$0x1]  ;;  %v3237_v35 = vsel %vm1753_vm4, %v3236_v37, %v3232_v44  ;;  %vm5862_vm4 = vmmov %vm5861_vm2  ;;  %v749_v37 = vrot.slane %v4074_v15, %v4563_v17 }
 0x206   :  { %v1775_v14 = vsel %vm5860_vm3, %v1773_v61, %v1768_v52  ;;  %v3988_v7 = vsel %vm5861_vm2, %v3987_v48, 0.0  ;;  %v3189_v2 = vpop.permute.xlu1 %3188  ;;  %vm5863_vm3 = vcmask 392512   ;;  %v733_v52 = vrot.slane %v4074_v15, %v4549_v58 }
 0x207   :  { %v1711_v42 = vpop.permute.xlu0 %1710  ;;  %3989 = vadd.xlane.f32.xlu1 %v3988_v7  ;;  %v3241_v22 = vrot.slane %v3189_v2, %v5254_v49  ;;  %v745_v61 = vrot.slane %v4074_v15, %v4560_v5  ;;  %v1334_v48 = vcombine.low %v1312_v3, %v1319_v19  ;;  %v1351_v7 = vcombine.low %v689_v12, %v693_v29 }
 0x208   :  { %v1780_v26 = vrot.slane %v1711_v42, %v5284_v1  ;;  %v3972_v16 = vld [vmem:[#allocation3 + $0x2] sm:$0x1]  ;;  %v1352_v42 = vcombine.low %v697_v36, %v701_v11  ;;  %v1353_v2 = vcombine.low %v705_v6, %v709_v4  ;;  %v757_v15 = vrot.slane %v5541_v46, %v4543_v45 }
 0x209   :  { %v3242_v9 = vsel %vm1760_vm5, %v3241_v22, %v3237_v35  ;;  %v3973_v31 = vsel %vm5862_vm4, %v3972_v16, 0.0  ;;  %v1400_v22 = vcombine.low %v721_v33, %v725_v0  ;;  %v1401_v16 = vcombine.low %v729_v30, %v733_v52 }
 0x20a   :  { %v5572_v49 = vsel %vm5863_vm3, %v1780_v26, %v1775_v14  ;;  %v3192_v8 = vpop.permute.xlu1 %3191  ;;  %3974 = vadd.xlane.f32.xlu0 %v3973_v31  ;;  %v1335_v14 = vcombine.low %v1326_v20, %v1333_v43  ;;  %v1354_v26 = vcombine.low %v713_v51, %v717_v13  ;;  %v1402_v31 = vcombine.low %v737_v23, %v741_v28 }
 0x20b   :  { %v3246_v44 = vrot.slane %v3192_v8, %v5263_v40  ;;  %v753_v40 = vrot.slane %v5541_v46, %v4539_v38  ;;  %v1403_v8 = vcombine.low %v745_v61, %v749_v37  ;;  %v761_v3 = vrot.slane %v5541_v46, %v4546_v57 }
 0x20c   :  { %v765_v12 = vrot.slane %v5541_v46, %v4549_v58  ;;  %v769_v19 = vrot.slane %v5541_v46, %v4552_v59  ;;  %v773_v20 = vrot.slane %v5541_v46, %v4555_v62  ;;  %v777_v43 = vrot.slane %v5541_v46, %v4560_v5 }
 0x20d   :  { %v5586_v35 = vsel %vm1767_vm6, %v3246_v44, %v3242_v9  ;;  %v781_v29 = vrot.slane %v5541_v46, %v4563_v17  ;;  %v1342_v36 = vrot.slane %v1334_v48, %v4566_v18  ;;  %v1349_v11 = vrot.slane %v1335_v14, %v4566_v18  ;;  %v5866_v14 = vld [vmem:[#allocation16_spill] sm:$0xff]  ;;  %vm5880_vm6 = vmmov %vm5863_vm3 }
 0x20e   :  { %v1361_v6 = vrot.slane %v1351_v7, %v4566_v18  ;;  %v1368_v4 = vrot.slane %v1352_v42, %v4566_v18  ;;  %v1375_v51 = vrot.slane %v1353_v2, %v4566_v18  ;;  %v1382_v13 = vrot.slane %v1354_v26, %v4566_v18 }
 0x20f   :  { %v1410_v33 = vrot.slane %v1400_v22, %v4566_v18  ;;  %v1417_v9 = vrot.slane %v1401_v16, %v4566_v18  ;;  %v1424_v0 = vrot.slane %v1402_v31, %v4566_v18  ;;  %v1431_v46 = vrot.slane %v1403_v8, %v4566_v18  ;;  %v5867_v22 = vld [vmem:[#allocation12_spill] sm:$0xff] }
 0x210   :  { %v1449_v30 = vcombine.low %v753_v40, %v757_v15  ;;  %v1450_v52 = vcombine.low %v761_v3, %v765_v12  ;;  %v1451_v23 = vcombine.low %v769_v19, %v773_v20  ;;  %v1452_v28 = vcombine.low %v777_v43, %v781_v29 }
 0x211   :  { %v789_v44 = vrot.slane %v4076_v41, %v4543_v45  ;;  %v793_v61 = vrot.slane %v4076_v41, %v4546_v57  ;;  %v797_v37 = vrot.slane %v4076_v41, %v4549_v58  ;;  %v805_v48 = vrot.slane %v4076_v41, %v4555_v62 }
 0x212   :  { %v5621_v7 = vadd.f32 -8.0, %v5866_v14  ;;  %v1350_v42 = vcombine.low %v1342_v36, %v1349_v11  ;;  %v809_v2 = vrot.slane %v4076_v41, %v4560_v5  ;;  %v813_v26 = vrot.slane %v4076_v41, %v4563_v17  ;;  %v5869_v14 = vld [vmem:[#allocation14_spill] sm:$0xff] }
 0x213   :  { %v1383_v16 = vcombine.low %v1361_v6, %v1368_v4  ;;  %v1384_v31 = vcombine.low %v1375_v51, %v1382_v13  ;;  %v1432_v40 = vcombine.low %v1410_v33, %v1417_v9  ;;  %v1433_v8 = vcombine.low %v1424_v0, %v1431_v46  ;;  %v5868_v51 = vld [vmem:[#allocation13_spill] sm:$0xff] }
 0x214   :  { %v1459_v15 = vrot.slane %v1449_v30, %v4566_v18  ;;  %v1466_v3 = vrot.slane %v1450_v52, %v4566_v18  ;;  %v1473_v12 = vrot.slane %v1451_v23, %v4566_v18  ;;  %v1480_v19 = vrot.slane %v1452_v28, %v4566_v18 }
 0x215   :  { %v1498_v20 = vcombine.low %v785_v34, %v789_v44  ;;  %v1499_v43 = vcombine.low %v793_v61, %v797_v37  ;;  %v1500_v29 = vcombine.low %v801_v55, %v805_v48  ;;  %v817_v41 = vrot.slane %v5548_v10, %v4539_v38 }
 0x216   :  { %v1501_v36 = vcombine.low %v809_v2, %v813_v26  ;;  %v821_v11 = vrot.slane %v5548_v10, %v4543_v45  ;;  %v825_v6 = vrot.slane %v5548_v10, %v4546_v57  ;;  %v829_v4 = vrot.slane %v5548_v10, %v4549_v58 }
 0x217   :  { %v833_v13 = vrot.slane %v5548_v10, %v4552_v59  ;;  %v837_v33 = vrot.slane %v5548_v10, %v4555_v62  ;;  %v841_v9 = vrot.slane %v5548_v10, %v4560_v5  ;;  %v845_v0 = vrot.slane %v5548_v10, %v4563_v17 }
 0x218   :  { %3200 = vperm.xlu1 %4109, %v5867_v22   ;;  %v1391_v46 = vrot.slane %v1383_v16, %v4566_v18  ;;  %v1398_v30 = vrot.slane %v1384_v31, %v4566_v18  ;;  %v1440_v52 = vrot.slane %v1432_v40, %v4566_v18  ;;  %v1447_v23 = vrot.slane %v1433_v8, %v4566_v18 }
 0x219   :  { %v1481_v28 = vcombine.low %v1459_v15, %v1466_v3  ;;  %v1482_v34 = vcombine.low %v1473_v12, %v1480_v19  ;;  %v1508_v44 = vrot.slane %v1498_v20, %v4566_v18  ;;  %v1515_v61 = vrot.slane %v1499_v43, %v4566_v18 }
 0x21a   :  { %v1522_v37 = vrot.slane %v1500_v29, %v4566_v18  ;;  %v1529_v55 = vrot.slane %v1501_v36, %v4566_v18  ;;  %v1547_v48 = vcombine.low %v817_v41, %v821_v11  ;;  %v1548_v10 = vcombine.low %v825_v6, %v829_v4  ;;  %v5870_v36 = vld [vmem:[#allocation15_spill] sm:$0xff] }
 0x21b   :  { %v1549_v2 = vcombine.low %v833_v13, %v837_v33  ;;  %v1550_v26 = vcombine.low %v841_v9, %v845_v0  ;;  %v849_v22 = vrot.slane %v5621_v7, %v4539_v38  ;;  %v853_v16 = vrot.slane %v5621_v7, %v4543_v45 }
 0x21c   :  { %3203 = vperm.xlu1 %4109, %v5868_v51   ;;  %v857_v31 = vrot.slane %v5621_v7, %v4546_v57  ;;  %v861_v40 = vrot.slane %v5621_v7, %v4549_v58  ;;  %v865_v8 = vrot.slane %v5621_v7, %v4552_v59  ;;  %v869_v15 = vrot.slane %v5621_v7, %v4555_v62 }
 0x21d   :  { %v1399_v3 = vcombine.low %v1391_v46, %v1398_v30  ;;  %v1448_v12 = vcombine.low %v1440_v52, %v1447_v23  ;;  %v873_v19 = vrot.slane %v5621_v7, %v4560_v5  ;;  %v1489_v20 = vrot.slane %v1481_v28, %v4566_v18 }
 0x21e   :  { %v1496_v43 = vrot.slane %v1482_v34, %v4566_v18  ;;  %v1530_v29 = vcombine.low %v1508_v44, %v1515_v61  ;;  %v1531_v41 = vcombine.low %v1522_v37, %v1529_v55  ;;  %v1557_v11 = vrot.slane %v1547_v48, %v4566_v18  ;;  %v5871_v44 = vld [vmem:[#allocation17_spill] sm:$0xff] }
 0x21f   :  { %v1564_v6 = vrot.slane %v1548_v10, %v4566_v18  ;;  %v1571_v4 = vrot.slane %v1549_v2, %v4566_v18  ;;  %v1578_v51 = vrot.slane %v1550_v26, %v4566_v18  ;;  %v1596_v13 = vcombine.low %v849_v22, %v853_v16 }
 0x220   :  { %3206 = vperm.xlu1 %4109, %v5869_v14   ;;  %1719 = vperm.xlu0 %4108, %v1350_v42   ;;  %v877_v42 = vrot.slane %v5621_v7, %v4563_v17  ;;  %v1597_v33 = vcombine.low %v857_v31, %v861_v40  ;;  %v1598_v7 = vcombine.low %v865_v8, %v869_v15  ;;  %v5872_v14 = vld [vmem:[#allocation18_spill] sm:$0xff]  ;;  %vm5879_vm5 = vcmask 326912  }
 0x221   :  { %v881_v9 = vrot.slane %v5583_v27, %v4539_v38  ;;  %v885_v46 = vrot.slane %v5583_v27, %v4543_v45  ;;  %v889_v30 = vrot.slane %v5583_v27, %v4546_v57  ;;  %v893_v52 = vrot.slane %v5583_v27, %v4549_v58 }
 0x222   :  { %v1599_v0 = vcombine.low %v873_v19, %v877_v42  ;;  %v897_v23 = vrot.slane %v5583_v27, %v4552_v59  ;;  %v901_v28 = vrot.slane %v5583_v27, %v4555_v62  ;;  %v905_v34 = vrot.slane %v5583_v27, %v4560_v5 }
 0x223   :  { %v909_v38 = vrot.slane %v5583_v27, %v4563_v17  ;;  %v1497_v45 = vcombine.low %v1489_v20, %v1496_v43  ;;  %v1538_v57 = vrot.slane %v1530_v29, %v4566_v18  ;;  %v1545_v58 = vrot.slane %v1531_v41, %v4566_v18  ;;  %v5874_v41 = vld [vmem:[#allocation20_spill] sm:$0xff] }
 0x224   :  { %3209 = vperm.xlu1 %4109, %v5870_v36   ;;  %1722 = vperm.xlu0 %4108, %v1399_v3   ;;  %v1579_v61 = vcombine.low %v1557_v11, %v1564_v6  ;;  %v1580_v37 = vcombine.low %v1571_v4, %v1578_v51  ;;  %v1606_v59 = vrot.slane %v1596_v13, %v4566_v18  ;;  %v5875_v4 = vld [vmem:[#allocation21_spill] sm:$0xff]  ;;  %v5876_v13 = vld [vmem:[#allocation22_spill] sm:$0xff] }
 0x225   :  { %v1613_v62 = vrot.slane %v1597_v33, %v4566_v18  ;;  %v1620_v55 = vrot.slane %v1598_v7, %v4566_v18  ;;  %v1627_v5 = vrot.slane %v1599_v0, %v4566_v18  ;;  %v1645_v48 = vcombine.low %v881_v9, %v885_v46  ;;  %v5717_v33 = vpop.permute.xlu0 %1713  ;;  %v5877_v7 = vld [vmem:[#allocation24_spill] sm:$0xff]  ;;  %v5878_v0 = vld [vmem:[#allocation23_spill] sm:$0xff] }
 0x226   :  { %v1646_v17 = vcombine.low %v889_v30, %v893_v52  ;;  %v1647_v27 = vcombine.low %v897_v23, %v901_v28  ;;  %v1648_v10 = vcombine.low %v905_v34, %v909_v38  ;;  %v1546_v2 = vcombine.low %v1538_v57, %v1545_v58  ;;  %v5721_v30 = vpop.permute.xlu1 %3194 }
 0x227   :  { %v1587_v26 = vrot.slane %v1579_v61, %v4566_v18  ;;  %v1594_v22 = vrot.slane %v1580_v37, %v4566_v18  ;;  %v1628_v16 = vcombine.low %v1606_v59, %v1613_v62  ;;  %v1629_v31 = vcombine.low %v1620_v55, %v1627_v5 }
 0x228   :  { %3212 = vperm.xlu1 %4109, %v5871_v44   ;;  %1725 = vperm.xlu0 %4108, %v1448_v12   ;;  %v1655_v40 = vrot.slane %v1645_v48, %v4566_v18  ;;  %v1662_v8 = vrot.slane %v1646_v17, %v4566_v18  ;;  %v1669_v15 = vrot.slane %v1647_v27, %v4566_v18  ;;  %v5873_v12 = vld [vmem:[#allocation19_spill] sm:$0xff]  ;;  %v3954_v9 = vrot.slane %v5877_v7, 4 }
 0x229   :  { %v1676_v3 = vrot.slane %v1648_v10, %v4566_v18  ;;  %v1595_v19 = vcombine.low %v1587_v26, %v1594_v22  ;;  %v1636_v42 = vrot.slane %v1628_v16, %v4566_v18  ;;  %v1643_v20 = vrot.slane %v1629_v31, %v4566_v18 }
 0x22a   :  { %v1677_v43 = vcombine.low %v1655_v40, %v1662_v8  ;;  %v3965_v46 = vrot.slane %v5878_v0, 4  ;;  %v3955_v23 = vadd.f32 %v3954_v9, %v5877_v7 }
 0x22b   :  { %v1678_v29 = vcombine.low %v1669_v15, %v1676_v3  ;;  %v1644_v36 = vcombine.low %v1636_v42, %v1643_v20 }
 0x22c   :  { %3215 = vperm.xlu1 %4109, %v5872_v14   ;;  %1728 = vperm.xlu0 %4108, %v1497_v45   ;;  %v1685_v11 = vrot.slane %v1677_v43, %v4566_v18  ;;  %v3966_v34 = vadd.f32 %v3965_v46, %v5878_v0  ;;  %v3956_v45 = vrot.slane %v3955_v23, 2 }
 0x22d   :  { %v1692_v6 = vrot.slane %v1678_v29, %v4566_v18 }
 0x22e   :  { %v3967_v61 = vrot.slane %v3966_v34, 2  ;;  %v3957_v55 = vadd.f32 %v3956_v45, %v3955_v23 }
 0x22f   :  { %v1693_v51 = vcombine.low %v1685_v11, %v1692_v6 }
 0x230   :  { %3218 = vperm.xlu1 %4109, %v5873_v12   ;;  %1731 = vperm.xlu0 %4108, %v1546_v2   ;;  %v3968_v5 = vadd.f32 %v3967_v61, %v3966_v34  ;;  %v3958_v10 = vrot.slane %v3957_v55, 1 }
 0x232   :  { %v3969_v14 = vrot.slane %v3968_v5, 1  ;;  %v3959_v22 = vadd.f32 %v3958_v10, %v3957_v55 }
 0x234   :  { %3221 = vperm.xlu1 %4109, %v5874_v41   ;;  %1734 = vperm.xlu0 %4108, %v1595_v19   ;;  %v3970_v16 = vadd.f32 %v3969_v14, %v3968_v5 }
 0x238   :  { %3224 = vperm.xlu1 %4109, %v5875_v4   ;;  %1737 = vperm.xlu0 %4108, %v1644_v36  }
 0x23c   :  { %1740 = vperm.xlu0 %4108, %v1693_v51  }
 0x240   :  { %3227 = vperm.xlu0 %4108, %v5876_v13  }
 0x250   :  { %v3942_v52 = vpop.xlane.xlu0 %3941 }
 0x251   :  { %v3943_v28 = vrot.slane %v3942_v52, 4 }
 0x253   :  { %v3944_v38 = vmin.f32 %v3942_v52, %v3943_v28  ;;  %v3931_v44 = vpop.xlane.xlu1 %3930 }
 0x254   :  { %v3932_v58 = vrot.slane %v3931_v44, 4 }
 0x255   :  { %v3945_v57 = vrot.slane %v3944_v38, 2 }
 0x256   :  { %v3933_v37 = vmax.f32 %v3931_v44, %v3932_v58 }
 0x257   :  { %v3946_v59 = vmin.f32 %v3944_v38, %v3945_v57  ;;  %v5725_v31 = vpop.permute.xlu1 %3197 }
 0x258   :  { %v3934_v62 = vrot.slane %v3933_v37, 2  ;;  %v1717_v40 = vpop.permute.xlu0 %1716 }
 0x259   :  { %v3947_v17 = vrot.slane %v3946_v59, 1 }
 0x25a   :  { %v3935_v48 = vmax.f32 %v3933_v37, %v3934_v62  ;;  %v1794_v37 = vrot.slane %v1717_v40, %v5302_v56  ;;  %v3251_v62 = vrot.slane %v5721_v30, %v5276_v54 }
 0x25b   :  { %v3948_v26 = vmin.f32 %v3946_v59, %v3947_v17  ;;  %v1787_v59 = vrot.slane %v5717_v33, %v5293_v63 }
 0x25c   :  { %v3936_v27 = vrot.slane %v3935_v48, 1 }
 0x25d   :  { %v1789_v10 = vsel %vm1788_vm9, %v1787_v59, %v5572_v49 }
 0x25e   :  { %v3937_v2 = vmax.f32 %v3935_v48, %v3936_v27  ;;  %v3256_v48 = vrot.slane %v5725_v31, %v5284_v1  ;;  %v1796_v33 = vsel %vm1795_vm10, %v1794_v37, %v1789_v10 }
 0x260   :  { %4082 = vpush %v3937_v2 }
 0x261   :  { %4084 = vpush %v3948_v26  ;;  %v3252_v26 = vsel %vm5879_vm5, %v3251_v62, %v5586_v35 }
 0x262   :  { %4086 = vpush %v3959_v22 }
 0x263   :  { %4088 = vpush %v3970_v16 }
 0x290   :  { %v3990_v8 = vpop.xlane.xlu1 %3989 }
 0x291   :  { %v3991_v15 = vrot.slane %v3990_v8, 4  ;;  %s5727_s1 = spop %4082 }
 0x292   :  { %s5729_s2 = spop %4084 }
 0x293   :  { %v3992_v3 = vadd.f32 %v3991_v15, %v3990_v8  ;;  %s5731_s3 = spop %4086  ;;  %v3975_v19 = vpop.xlane.xlu0 %3974 }
 0x294   :  { %v3201_v12 = vpop.permute.xlu1 %3200  ;;  %v3983_v42 = vstv %s5731_s3  ;;  %s5734_s29 = spop %4088  ;;  %v3976_v20 = vrot.slane %v3975_v19, 4  ;;  %p4002_p1 = scmp.gt.f32.partialorder %s5731_s3, 1.0 }
 0x295   :  { %4174 = vrcp.f32 %v3983_v42  ;;  %v3998_v43 = vstv %s5734_s29  ;;  %v3993_v29 = vrot.slane %v3992_v3, 2  ;;  %v3261_v14 = vrot.slane %v3201_v12, %v5293_v63  ;;  %p4004_p0 = scmp.gt.f32.partialorder %s5734_s29, 1.0 }
 0x296   :  { %4176 = vrcp.f32 %v3998_v43  ;;  %v3977_v41 = vadd.f32 %v3976_v20, %v3975_v19  ;;  %v3257_v63 = vsel %vm5880_vm6, %v3256_v48, %v3252_v26 }
 0x297   :  { %v3994_v4 = vadd.f32 %v3993_v29, %v3992_v3  ;;  %v3262_v8 = vsel %vm1788_vm9, %v3261_v14, %v3257_v63  ;;  %vm5881_vm9 = vcmp.eq.s32.totalorder %v4467_v50, 1 }
 0x298   :  { %v3204_v36 = vpop.permute.xlu1 %3203  ;;  %v3978_v11 = vrot.slane %v3977_v41, 2 }
 0x299   :  { %v3995_v0 = vrot.slane %v3994_v4, 1  ;;  %v3266_v54 = vrot.slane %v3204_v36, %v5302_v56 }
 0x29a   :  { %v3979_v6 = vadd.f32 %v3978_v11, %v3977_v41 }
 0x29b   :  { %v1720_v13 = vpop.permute.xlu0 %1719  ;;  %v3996_v28 = vadd.f32 %v3995_v0, %v3994_v4  ;;  %v3267_v3 = vsel %vm1795_vm10, %v3266_v54, %v3262_v8 }
 0x29c   :  { %v3207_v51 = vpop.permute.xlu1 %3206  ;;  %v3980_v7 = vrot.slane %v3979_v6, 1  ;;  %v1801_v55 = vrot.slane %v1720_v13, %v5313_v47 }
 0x29d   :  { %v3271_v1 = vrot.slane %v3207_v51, %v5313_v47 }
 0x29e   :  { %v3981_v9 = vadd.f32 %v3980_v7, %v3979_v6  ;;  %v1803_v22 = vsel %vm1802_vm11, %v1801_v55, %v1796_v33 }
 0x29f   :  { %v1723_v52 = vpop.permute.xlu0 %1722 }
 0x2a0   :  { %v3210_v46 = vpop.permute.xlu1 %3209  ;;  %4090 = vpush %v3981_v9  ;;  %v1808_v17 = vrot.slane %v1723_v52, %v5329_v24 }
 0x2a1   :  { %v3276_v31 = vrot.slane %v3210_v46, %v5329_v24  ;;  %v3272_v24 = vsel %vm1802_vm11, %v3271_v1, %v3267_v3 }
 0x2a2   :  { %v4175_v23 = vpop.eup %4174  ;;  %v1810_v40 = vsel %vm1809_vm12, %v1808_v17, %v1803_v22 }
 0x2a3   :  { %v4177_v34 = vpop.eup %4176  ;;  %4092 = vpush %v4175_v23  ;;  %v1726_v44 = vpop.permute.xlu0 %1725 }
 0x2a4   :  { %v3213_v38 = vpop.permute.xlu1 %3212  ;;  %4094 = vpush %v3996_v28  ;;  %v1815_v2 = vrot.slane %v1726_v44, %v5337_v32 }
 0x2a5   :  { %4096 = vpush %v4177_v34  ;;  %v3281_v15 = vrot.slane %v3213_v38, %v5337_v32  ;;  %v3277_v32 = vsel %vm1809_vm12, %v3276_v31, %v3272_v24 }
 0x2a6   :  { %v1817_v35 = vsel %vm1816_vm13, %v1815_v2, %v1810_v40 }
 0x2a7   :  { %v1729_v57 = vpop.permute.xlu0 %1728 }
 0x2a8   :  { %v3216_v45 = vpop.permute.xlu1 %3215  ;;  %v1822_v30 = vrot.slane %v1729_v57, %v5343_v53 }
 0x2a9   :  { %v3286_v12 = vrot.slane %v3216_v45, %v5343_v53  ;;  %v3282_v53 = vsel %vm1816_vm13, %v3281_v15, %v3277_v32 }
 0x2aa   :  { %v1824_v19 = vsel %vm1823_vm14, %v1822_v30, %v1817_v35 }
 0x2ab   :  { %v1732_v61 = vpop.permute.xlu0 %1731  ;;  %v3287_v51 = vsel %vm1823_vm14, %v3286_v12, %v3282_v53  ;;  %vm5882_vm14 = vmmov %vm5861_vm2 }
 0x2ac   :  { %v3219_v58 = vpop.permute.xlu1 %3218  ;;  %v1829_v16 = vrot.slane %v1732_v61, %v5349_v21 }
 0x2ad   :  { %v3291_v20 = vrot.slane %v3219_v58, %v5349_v21 }
 0x2ae   :  { %v1831_v43 = vsel %vm1830_vm15, %v1829_v16, %v1824_v19 }
 0x2af   :  { %v1735_v5 = vpop.permute.xlu0 %1734  ;;  %v3292_v13 = vsel %vm1830_vm15, %v3291_v20, %v3287_v51 }
 0x2b0   :  { %v3222_v27 = vpop.permute.xlu1 %3221  ;;  %v1836_v56 = vrot.slane %v1735_v5, %v5358_v25 }
 0x2b1   :  { %v3296_v41 = vrot.slane %v3222_v27, %v5358_v25 }
 0x2b2   :  { %v1838_v36 = vsel %vm1837_vm0, %v1836_v56, %v1831_v43 }
 0x2b3   :  { %v1738_v49 = vpop.permute.xlu0 %1737  ;;  %v3297_v25 = vsel %vm1837_vm0, %v3296_v41, %v3292_v13  ;;  %vm5883_vm0 = vmmov %vm5861_vm2 }
 0x2b4   :  { %v1843_v47 = vrot.slane %v1738_v49, %v5366_v39  ;;  %v3225_v42 = vpop.permute.xlu1 %3224 }
 0x2b5   :  { %v3301_v6 = vrot.slane %v3225_v42, %v5366_v39 }
 0x2b6   :  { %v1845_v4 = vsel %vm1844_vm8, %v1843_v47, %v1838_v36 }
 0x2b7   :  { %v1741_v29 = vpop.permute.xlu0 %1740  ;;  %v3302_v46 = vsel %vm1844_vm8, %v3301_v6, %v3297_v25 }
 0x2b8   :  { %v1850_v11 = vrot.slane %v1741_v29, %v5384_v60 }
 0x2ba   :  { %v1852_v21 = vsel %vm1851_vm7, %v1850_v11, %v1845_v4 }
 0x2bb   :  { %v1859_v7 = vrot.slane %v1852_v21, %v4566_v18  ;;  %v3228_v9 = vpop.permute.xlu0 %3227 }
 0x2bc   :  { %v3306_v0 = vrot.slane %v3228_v9, %v5384_v60 }
 0x2bd   :  { %v1866_v39 = vrot.slane %v1859_v7, %v4566_v18 }
 0x2be   :  { %v3307_v52 = vsel %vm1851_vm7, %v3306_v0, %v3302_v46 }
 0x2bf   :  { %v3314_v23 = vrot.slane %v3307_v52, %v4566_v18  ;;  %v1868_v34 = vsel %vm365_vm1, %v1866_v39, 100.0 }
 0x2c1   :  { %v3321_v28 = vrot.slane %v3314_v23, %v4566_v18  ;;  %v4032_v18 = vstv %s5808_s0 }
 0x2c3   :  { %v3323_v38 = vsel %vm5881_vm9, %v3321_v28, %v1868_v34 }
 0x2c4   :  { %3324 = vst [vmem:[#allocation2] sm:$0x1] %v3323_v38 }
 0x2cb   :  { %v4006_v60 = vld [vmem:[#allocation2] sm:$0x1] }
 0x2cc   :  { %v4011_v44 = vadd.f32 8.0, %v4006_v60  ;;  %vm4007_vm8 = vcmp.lt.f32.partialorder %v4006_v60, -3.0  ;;  %vm4008_vm1 = vcmp.gt.f32.partialorder %v4006_v60, -1.0  ;;  %vm4009_vm7 = vcmp.lt.f32.partialorder %v4006_v60, 3.0 }
 0x2cd   :  { %vm4010_vm10 = vmand %vm4008_vm1, %vm4009_vm7 }
 0x2ce   :  { %v4012_v45 = vsel %vm4007_vm8, %v4011_v44, %v4006_v60 }
 0x2cf   :  { %v4033_v57 = vsub.f32 %v4032_v18, %v4012_v45  ;;  %v4019_v61 = vmul.f32 %v4012_v45, %v4012_v45 }
 0x2d1   :  { %s4091_s30 = spop %4090  ;;  %v4034_v58 = vmax.f32 %v4033_v57, 0.0 }
 0x2d3   :  { %v4035_v62 = vmul.f32 %v4034_v58, %v4034_v58 }
 0x2d4   :  { %s4093_s7 = spop %4092 }
 0x2d5   :  { %s3986_s8 = smul.f32 %s4093_s7, %s4091_s30  ;;  %s4095_s9 = spop %4094 }
 0x2d6   :  { %s4097_s10 = spop %4096 }
 0x2d7   :  { %s5885_s2 = smov (!%p4004_p0, %s5729_s2), %s3986_s8  ;;  %s4001_s11 = smul.f32 %s4097_s10, %s4095_s9 }
 0x2d8   :  { %v4013_v50 = vstv %s5885_s2 }
 0x2d9   :  { %s5887_s1 = smov (!%p4002_p1, %s5727_s1), %s4001_s11  ;;  %vm4014_vm11 = vcmp.gt.f32.partialorder %v4012_v45, %v4013_v50 }
 0x2da   :  { %vm4015_vm12 = vmand %vm4010_vm10, %vm4014_vm11  ;;  %v4016_v37 = vstv %s5887_s1 }
 0x2db   :  { %v4020_v59 = vsel %vm4015_vm12, %v4019_v61, 0.0  ;;  %vm4017_vm13 = vcmp.lt.f32.partialorder %v4012_v45, %v4016_v37 }
 0x2dc   :  { %v4021_v55 = vsel %vm5882_vm14, %v4020_v59, 0.0  ;;  %vm4018_vm15 = vmand %vm4007_vm8, %vm4017_vm13 }
 0x2dd   :  { %4022 = vadd.xlane.f32.xlu1 %v4021_v55  ;;  %v4036_v5 = vsel %vm4018_vm15, %v4035_v62, 0.0 }
 0x2de   :  { %v4037_v48 = vsel %vm5883_vm0, %v4036_v5, 0.0 }
 0x2df   :  { %4038 = vadd.xlane.f32.xlu0 %v4037_v48 }
 0x366   :  { %v4023_v17 = vpop.xlane.xlu1 %4022 }
 0x367   :  { %v4024_v27 = vrot.slane %v4023_v17, 4 }
 0x368   :  { %v4039_v10 = vpop.xlane.xlu0 %4038 }
 0x369   :  { %v4025_v14 = vadd.f32 %v4024_v27, %v4023_v17  ;;  %v4040_v2 = vrot.slane %v4039_v10, 4 }
 0x36b   :  { %v4026_v33 = vrot.slane %v4025_v14, 2  ;;  %v4041_v54 = vadd.f32 %v4040_v2, %v4039_v10 }
 0x36d   :  { %v4027_v30 = vadd.f32 %v4026_v33, %v4025_v14  ;;  %v4042_v26 = vrot.slane %v4041_v54, 2 }
 0x36f   :  { %v4028_v1 = vrot.slane %v4027_v30, 1  ;;  %v4043_v22 = vadd.f32 %v4042_v26, %v4041_v54 }
 0x371   :  { %v4029_v16 = vadd.f32 %v4028_v1, %v4027_v30  ;;  %v4044_v49 = vrot.slane %v4043_v22, 1 }
 0x373   :  { %4098 = vpush %v4029_v16  ;;  %v4045_v63 = vadd.f32 %v4044_v49, %v4043_v22 }
 0x375   :  { %4100 = vpush %v4045_v63 }
 0x3a4   :  { %s4099_s0 = spop %4098 }
 0x3a6   :  { %s4101_s12 = spop %4100 }
 0x3a7   :  { %s4048_s13 = sadd.f32 %s4101_s12, %s4099_s0 }
 0x3a9   :  { %4050 = sst [smem:[#allocation5]] %s4048_s13 }
 0x3aa   :  { %4058 = dma.smem_to_hbm %s4193_s14, 16, %s5812_s4, [#allocation6]  }
 0x3ab   :  { %4186 = dma.done.wait [#allocation6], 16  }
 0x3ac   :  { %4187 = vsyncadd [#allocation6], 4294967280 }
 0x3ad   :  { %4062 = sfence }
 0x3ae   :  { %4063 = vsyncpa [#allocation6], 1 }

</bundles_post_ra>
